<compile_context>
chip_gen: v7x
topology: tpu7x:2x2x1
jax: 0.10.0
libtpu: 0.0.40
codegen_flags: <defaults>
</compile_context>

<pallas_src>
import math

import jax
import jax.numpy as jnp
import numpy as np
from jax.experimental import pallas as pl
from jax.experimental.pallas import tpu as pltpu


def _make_valle_attention_kernel(num_heads, head_dim, mask_per_head, emit_kv):
    H, D = num_heads, head_dim

    def kernel(x_ref, wqkv_ref, bqkv_ref, wout_ref, bout_ref,
               cos_ref, sin_ref, mask_ref, *out_and_scratch):
        if emit_kv:
            o_ref, k_out_ref, v_out_ref, ctx_ref = out_and_scratch
        else:
            o_ref, ctx_ref = out_and_scratch
            k_out_ref = v_out_ref = None

        T, E = x_ref.shape
        half = D // 2
        scale = 1.0 / math.sqrt(D)
        neg_min = jnp.finfo(jnp.float32).min

        # QKV projection: bf16 MXU operands, f32 accumulation.
        x = x_ref[...].astype(jnp.bfloat16)
        qkv = jnp.dot(x, wqkv_ref[...], preferred_element_type=jnp.float32)
        qkv = qkv + bqkv_ref[...]

        cosf = cos_ref[...]          # (T, D) de-interleaved tables, f32
        sinf = sin_ref[...]

        def rope(t):
            # de-interleaved ("rotate half") RoPE: concat + VPU multiplies, no MXU.
            rot = jnp.concatenate([-t[:, half:], t[:, :half]], axis=-1)
            return t * cosf + rot * sinf

        # TODO(synk): replace the per-head (T, T) score block with a flash-style
        # online-softmax T-tiling (and a fori_loop / grid axis over heads) for long
        # sequences; the current layout only targets short-T inference shapes.
        for h in range(H):
            q = rope(qkv[:, h * D:(h + 1) * D])
            k = rope(qkv[:, E + h * D:E + (h + 1) * D])
            v = qkv[:, 2 * E + h * D:2 * E + (h + 1) * D]

            s = jax.lax.dot_general(
                q.astype(jnp.bfloat16), k.astype(jnp.bfloat16),
                (((1,), (1,)), ((), ())),
                preferred_element_type=jnp.float32) * scale
            s = s + mask_ref[h if mask_per_head else 0]
            s = jnp.maximum(s, neg_min)                       # matches torch clamp
            s = s - jnp.max(s, axis=-1, keepdims=True)
            p = jnp.exp(s)
            p = p * pl.reciprocal(jnp.sum(p, axis=-1, keepdims=True), approx=True)

            ctx = jnp.dot(p.astype(jnp.bfloat16), v.astype(jnp.bfloat16),
                          preferred_element_type=jnp.float32)
            ctx_ref[:, h * D:(h + 1) * D] = ctx.astype(ctx_ref.dtype)

            if emit_kv:
                k_out_ref[:, h * D:(h + 1) * D] = k.astype(k_out_ref.dtype)
                v_out_ref[:, h * D:(h + 1) * D] = v.astype(v_out_ref.dtype)

        # Single MXU-shape-optimal out_proj (contraction K = E).
        out = jnp.dot(ctx_ref[...], wout_ref[...], preferred_element_type=jnp.float32)
        o_ref[...] = (out + bout_ref[...]).astype(o_ref.dtype)

    return kernel


def valle_attention_forward(
    hidden_states,            # (B, T, E)
    w_qkv, b_qkv,             # (3E, E), (3E,) or None   -- att_proj
    w_out, b_out,             # (E, E),  (E,)  or None   -- out_proj
    num_heads,
    attention_mask=None,      # additive bias, broadcastable to (B, H, T, T)
    rotary_pe=None,           # (B_rope, T, D//2, 2) = stack([cos, sin], -1)
    past_key_value=None,
    use_cache=False,
):
    # TODO(synk): past_key_value (KV-cache concat) not supported in the Pallas path.
    assert past_key_value is None
    B, T, E = hidden_states.shape
    assert E % num_heads == 0
    H = num_heads
    D = E // num_heads
    out_dtype = hidden_states.dtype

    # --- host-side one-time layout plumbing -------------------------------
    # De-interleave the q/k head dims (even features first, odd second per head) so
    # in-kernel RoPE becomes a rotate-half instead of a per-head DxD pair-swap matmul.
    perm_d = np.concatenate([np.arange(0, D, 2), np.arange(1, D, 2)])
    inv_perm_d = np.argsort(perm_d)
    qk_perm = (np.arange(H)[:, None] * D + perm_d[None, :]).reshape(-1)
    row_perm = np.concatenate([qk_perm, E + qk_perm, 2 * E + np.arange(E)])

    wqkv_t = jnp.asarray(w_qkv)[row_perm].T.astype(jnp.bfloat16)       # (E, 3E) bf16
    wout_t = jnp.asarray(w_out).T.astype(jnp.bfloat16)                 # (E, E)  bf16
    bqkv = (jnp.zeros((3 * E,), jnp.float32) if b_qkv is None
            else jnp.asarray(b_qkv, jnp.float32))[row_perm].reshape(1, 3 * E)
    bout = (jnp.zeros((1, E), jnp.float32) if b_out is None
            else jnp.asarray(b_out, jnp.float32).reshape(1, E))

    # De-interleaved cos/sin tables: [cos_0..cos_{D/2-1}, cos_0..cos_{D/2-1}].
    if rotary_pe is None:
        cos_d = jnp.ones((1, T, D), jnp.float32)
        sin_d = jnp.zeros((1, T, D), jnp.float32)
    else:
        rp = jnp.asarray(rotary_pe, jnp.float32)                       # (B_r, T, D//2, 2)
        cos_d = jnp.concatenate([rp[..., 0], rp[..., 0]], axis=-1)
        sin_d = jnp.concatenate([rp[..., 1], rp[..., 1]], axis=-1)
    B_r = cos_d.shape[0]

    # Compact additive bias: never broadcast over heads/batch on the host side.
    if attention_mask is None:
        mask = jnp.zeros((1, 1, T, T), jnp.float32)
    else:
        mask = jnp.asarray(attention_mask, jnp.float32)
        if mask.ndim == 2:
            mask = mask[None, None]            # (T, T)    -> (1, 1, T, T)
        elif mask.ndim == 3:
            mask = mask[:, None]               # (B, T, T) -> (B, 1, T, T)
        mask = jnp.broadcast_to(mask, mask.shape[:2] + (T, T))
    B_m, H_m = mask.shape[:2]

    # --- pallas call --------------------------------------------------------
    kernel = _make_valle_attention_kernel(H, D, H_m > 1, use_cache)

    x_idx = lambda b: (b, 0, 0)
    c2 = lambda b: (0, 0)
    rope_idx = lambda b: ((b if B_r > 1 else 0), 0, 0)
    mask_idx = lambda b: ((b if B_m > 1 else 0), 0, 0, 0)

    in_specs = [
        pl.BlockSpec((None, T, E), x_idx),           # hidden states (per batch)
        pl.BlockSpec((E, 3 * E), c2),                # Wqkv^T (bf16, resident)
        pl.BlockSpec((1, 3 * E), c2),
        pl.BlockSpec((E, E), c2),                    # Wout^T (bf16, resident)
        pl.BlockSpec((1, E), c2),
        pl.BlockSpec((None, T, D), rope_idx),        # cos table (de-interleaved)
        pl.BlockSpec((None, T, D), rope_idx),        # sin table
        pl.BlockSpec((None, H_m, T, T), mask_idx),   # compact additive bias
    ]

    if use_cache:
        out_shape = (jax.ShapeDtypeStruct((B, T, E), out_dtype),
                     jax.ShapeDtypeStruct((B, T, E), out_dtype),    # present K (lane-dense)
                     jax.ShapeDtypeStruct((B, T, E), out_dtype))    # present V (lane-dense)
        out_specs = (pl.BlockSpec((None, T, E), x_idx),
                     pl.BlockSpec((None, T, E), x_idx),
                     pl.BlockSpec((None, T, E), x_idx))
    else:
        out_shape = jax.ShapeDtypeStruct((B, T, E), out_dtype)
        out_specs = pl.BlockSpec((None, T, E), x_idx)

    result = pl.pallas_call(
        kernel,
        out_shape=out_shape,
        grid=(B,),
        in_specs=in_specs,
        out_specs=out_specs,
        scratch_shapes=[pltpu.VMEM((T, E), jnp.bfloat16)],   # ctx slab for fused out_proj
        compiler_params=pltpu.CompilerParams(
            dimension_semantics=("parallel",),
        ),
    )(hidden_states, wqkv_t, bqkv, wout_t, bout, cos_d, sin_d, mask)

    if use_cache:
        attn_out, k_flat, v_flat = result
        # lane-dense (B, T, E) kernel outputs -> module layout (B, H, T, D);
        # undo the de-interleave permutation on K's head dim.
        k = k_flat.reshape(B, T, H, D)[..., inv_perm_d].transpose(0, 2, 1, 3)
        v = v_flat.reshape(B, T, H, D).transpose(0, 2, 1, 3)
        present = (k, v)
    else:
        attn_out = result
        present = None
    # attn_dropout / resid_dropout are identity in inference mode.
    return attn_out, present


# --------------------------- pure-JAX reference ---------------------------
def _reference(x, w_qkv, b_qkv, w_out, b_out, num_heads, attention_mask, rotary_pe):
    B, T, E = x.shape
    D = E // num_heads
    qkv = x @ jnp.asarray(w_qkv).T + jnp.asarray(b_qkv)
    q, k, v = jnp.split(qkv, 3, axis=-1)

    def split_heads(t):
        return t.reshape(B, T, num_heads, D).transpose(0, 2, 1, 3)

    q, k, v = split_heads(q), split_heads(k), split_heads(v)

    def rope(t):
        ts = t.reshape(*t.shape[:-1], D // 2, 2)
        r = rotary_pe[:, None].astype(t.dtype)        # (b_rope, 1, T, D//2, 2)
        o0 = ts[..., 0] * r[..., 0] - ts[..., 1] * r[..., 1]
        o1 = ts[..., 1] * r[..., 0] + ts[..., 0] * r[..., 1]
        return jnp.stack([o0, o1], -1).reshape(t.shape)

    q, k = rope(q), rope(k)
    scores = jnp.einsum("bhtd,bhsd->bhts", q, k) / math.sqrt(D)
    if attention_mask is not None:
        scores = scores + attention_mask
    scores = jnp.maximum(scores, jnp.finfo(scores.dtype).min)
    w = jax.nn.softmax(scores.astype(jnp.float32), axis=-1).astype(x.dtype)
    ctx = jnp.einsum("bhts,bhsd->bhtd", w, v)
    ctx = ctx.transpose(0, 2, 1, 3).reshape(B, T, E)
    out = ctx @ jnp.asarray(w_out).T + jnp.asarray(b_out)
    return out, (k, v)


if __name__ == "__main__":
    hidden_size, num_heads = 32, 4
    head_dim = hidden_size // num_heads
    B, T = 2, 8

    key = jax.random.PRNGKey(0)
    ks = jax.random.split(key, 5)
    x = jax.random.normal(ks[0], (B, T, hidden_size), jnp.float32)
    w_qkv = jax.random.normal(ks[1], (3 * hidden_size, hidden_size), jnp.float32) * 0.1
    b_qkv = jax.random.normal(ks[2], (3 * hidden_size,), jnp.float32) * 0.1
    w_out = jax.random.normal(ks[3], (hidden_size, hidden_size), jnp.float32) * 0.1
    b_out = jax.random.normal(ks[4], (hidden_size,), jnp.float32) * 0.1

    # rotary_pe = stack([cos, sin], -1), shape (1, T, head_dim//2, 2)
    inv_freq = 1.0 / (10000.0 ** (jnp.arange(0, head_dim, 2, dtype=jnp.float32) / head_dim))
    pos = jnp.arange(T, dtype=jnp.float32)
    freqs = pos[:, None] * inv_freq[None, :]
    rotary_pe = jnp.stack([jnp.cos(freqs), jnp.sin(freqs)], -1)[None]

    # causal additive mask (1, 1, T, T) with -inf above the diagonal
    causal = jnp.where(jnp.tril(jnp.ones((T, T), dtype=bool)), 0.0, -jnp.inf)
    attention_mask = causal.astype(jnp.float32)[None, None]

    out, present = valle_attention_forward(
        x, w_qkv, b_qkv, w_out, b_out, num_heads,
        attention_mask=attention_mask, rotary_pe=rotary_pe, use_cache=True)
    jax.block_until_ready((out, present))

    # no-cache variant (no KV writeback)
    out_nc, present_nc = valle_attention_forward(
        x, w_qkv, b_qkv, w_out, b_out, num_heads,
        attention_mask=attention_mask, rotary_pe=rotary_pe, use_cache=False)
    jax.block_until_ready(out_nc)

    ref_out, ref_present = _reference(
        x, w_qkv, b_qkv, w_out, b_out, num_heads, attention_mask, rotary_pe)

    # bf16 MXU operands + approx reciprocal -> compare at bf16-level tolerance
    atol = rtol = 2e-2
    assert out.shape == ref_out.shape
    assert jnp.allclose(out, ref_out, atol=atol, rtol=rtol), \
        float(jnp.max(jnp.abs(out - ref_out)))
    assert jnp.allclose(out_nc, ref_out, atol=atol, rtol=rtol), \
        float(jnp.max(jnp.abs(out_nc - ref_out)))
    assert present_nc is None
    assert present[0].shape == ref_present[0].shape
    assert jnp.allclose(present[0], ref_present[0], atol=atol, rtol=rtol), \
        float(jnp.max(jnp.abs(present[0] - ref_present[0])))
    assert jnp.allclose(present[1], ref_present[1], atol=atol, rtol=rtol), \
        float(jnp.max(jnp.abs(present[1] - ref_present[1])))

    print("KERNEL_OK")
</pallas_src>

<mosaic_0001>
module attributes {stable_mosaic.version = 11 : i64} {
  func.func @kernel(%arg0: i32, %arg1: memref<1x8x32xf32, #tpu.memory_space<vmem>>, %arg2: memref<32x96xbf16, #tpu.memory_space<vmem>>, %arg3: memref<1x96xf32, #tpu.memory_space<vmem>>, %arg4: memref<32x32xbf16, #tpu.memory_space<vmem>>, %arg5: memref<1x32xf32, #tpu.memory_space<vmem>>, %arg6: memref<1x8x8xf32, #tpu.memory_space<vmem>>, %arg7: memref<1x8x8xf32, #tpu.memory_space<vmem>>, %arg8: memref<1x1x8x8xf32, #tpu.memory_space<vmem>>, %arg9: memref<1x8x32xf32, #tpu.memory_space<vmem>>, %arg10: memref<1x8x32xf32, #tpu.memory_space<vmem>>, %arg11: memref<1x8x32xf32, #tpu.memory_space<vmem>>, %arg12: memref<8x32xbf16, #tpu.memory_space<vmem>>) attributes {dimension_semantics = [#tpu.dimension_semantics<parallel>], iteration_bounds = array<i64: 2>, scalar_prefetch = 0 : i64, scratch_operands = 1 : i64, tpu.core_type = #tpu.core_type<tc>, window_params = [{transform_indices = @transform_0, window_bounds = array<i64: 1, 8, 32>}, {pipeline_mode = #tpu.pipeline_mode<synchronous>, transform_indices = @transform_1, window_bounds = array<i64: 32, 96>}, {pipeline_mode = #tpu.pipeline_mode<synchronous>, transform_indices = @transform_2, window_bounds = array<i64: 1, 96>}, {pipeline_mode = #tpu.pipeline_mode<synchronous>, transform_indices = @transform_3, window_bounds = array<i64: 32, 32>}, {pipeline_mode = #tpu.pipeline_mode<synchronous>, transform_indices = @transform_4, window_bounds = array<i64: 1, 32>}, {pipeline_mode = #tpu.pipeline_mode<synchronous>, transform_indices = @transform_5, window_bounds = array<i64: 1, 8, 8>}, {pipeline_mode = #tpu.pipeline_mode<synchronous>, transform_indices = @transform_6, window_bounds = array<i64: 1, 8, 8>}, {pipeline_mode = #tpu.pipeline_mode<synchronous>, transform_indices = @transform_7, window_bounds = array<i64: 1, 1, 8, 8>}, {transform_indices = @transform_8, window_bounds = array<i64: 1, 8, 32>}, {transform_indices = @transform_9, window_bounds = array<i64: 1, 8, 32>}, {transform_indices = @transform_10, window_bounds = array<i64: 1, 8, 32>}]} {
    %c0 = arith.constant 0 : index
    %c0_0 = arith.constant 0 : index
    %c0_1 = arith.constant 0 : index
    %0 = vector.load %arg1[%c0, %c0_0, %c0_1] : memref<1x8x32xf32, #tpu.memory_space<vmem>>, vector<1x8x32xf32>
    %1 = vector.shape_cast %0 : vector<1x8x32xf32> to vector<8x32xf32>
    %2 = arith.truncf %1 : vector<8x32xf32> to vector<8x32xbf16>
    %c0_2 = arith.constant 0 : index
    %c0_3 = arith.constant 0 : index
    %3 = vector.load %arg2[%c0_2, %c0_3] : memref<32x96xbf16, #tpu.memory_space<vmem>>, vector<32x96xbf16>
    %cst = arith.constant dense<0.000000e+00> : vector<8x96xf32>
    %4 = tpu.matmul %2, %3, %cst {dimension_numbers = #tpu.dot_dimension_numbers<[1], [0], [0], [1], [0, 0, 1, 1], [], []>} : vector<8x32xbf16>, vector<32x96xbf16>, vector<8x96xf32> -> vector<8x96xf32>
    %c0_4 = arith.constant 0 : index
    %c0_5 = arith.constant 0 : index
    %5 = vector.load %arg3[%c0_4, %c0_5] : memref<1x96xf32, #tpu.memory_space<vmem>>, vector<1x96xf32>
    %6 = vector.broadcast %5 : vector<1x96xf32> to vector<8x96xf32>
    %7 = arith.addf %4, %6 : vector<8x96xf32>
    %c0_6 = arith.constant 0 : index
    %c0_7 = arith.constant 0 : index
    %c0_8 = arith.constant 0 : index
    %8 = vector.load %arg6[%c0_6, %c0_7, %c0_8] : memref<1x8x8xf32, #tpu.memory_space<vmem>>, vector<1x8x8xf32>
    %9 = vector.shape_cast %8 : vector<1x8x8xf32> to vector<8x8xf32>
    %c0_9 = arith.constant 0 : index
    %c0_10 = arith.constant 0 : index
    %c0_11 = arith.constant 0 : index
    %10 = vector.load %arg7[%c0_9, %c0_10, %c0_11] : memref<1x8x8xf32, #tpu.memory_space<vmem>>, vector<1x8x8xf32>
    %11 = vector.shape_cast %10 : vector<1x8x8xf32> to vector<8x8xf32>
    %12 = vector.extract_strided_slice %7 {offsets = [0, 0], sizes = [8, 8], strides = [1, 1]} : vector<8x96xf32> to vector<8x8xf32>
    %13 = vector.extract_strided_slice %12 {offsets = [0, 4], sizes = [8, 4], strides = [1, 1]} : vector<8x8xf32> to vector<8x4xf32>
    %cst_12 = arith.constant 0.000000e+00 : f32
    %14 = vector.broadcast %cst_12 : f32 to vector<8x4xf32>
    %15 = arith.subf %14, %13 : vector<8x4xf32>
    %16 = vector.extract_strided_slice %12 {offsets = [0, 0], sizes = [8, 4], strides = [1, 1]} : vector<8x8xf32> to vector<8x4xf32>
    %17 = tpu.concatenate %15, %16 in 1 : vector<8x4xf32>, vector<8x4xf32> -> vector<8x8xf32>
    %18 = arith.mulf %12, %9 : vector<8x8xf32>
    %19 = arith.mulf %17, %11 : vector<8x8xf32>
    %20 = arith.addf %18, %19 : vector<8x8xf32>
    %21 = vector.extract_strided_slice %7 {offsets = [0, 32], sizes = [8, 8], strides = [1, 1]} : vector<8x96xf32> to vector<8x8xf32>
    %22 = vector.extract_strided_slice %21 {offsets = [0, 4], sizes = [8, 4], strides = [1, 1]} : vector<8x8xf32> to vector<8x4xf32>
    %cst_13 = arith.constant 0.000000e+00 : f32
    %23 = vector.broadcast %cst_13 : f32 to vector<8x4xf32>
    %24 = arith.subf %23, %22 : vector<8x4xf32>
    %25 = vector.extract_strided_slice %21 {offsets = [0, 0], sizes = [8, 4], strides = [1, 1]} : vector<8x8xf32> to vector<8x4xf32>
    %26 = tpu.concatenate %24, %25 in 1 : vector<8x4xf32>, vector<8x4xf32> -> vector<8x8xf32>
    %27 = arith.mulf %21, %9 : vector<8x8xf32>
    %28 = arith.mulf %26, %11 : vector<8x8xf32>
    %29 = arith.addf %27, %28 : vector<8x8xf32>
    %30 = vector.extract_strided_slice %7 {offsets = [0, 64], sizes = [8, 8], strides = [1, 1]} : vector<8x96xf32> to vector<8x8xf32>
    %31 = arith.truncf %20 : vector<8x8xf32> to vector<8x8xbf16>
    %32 = arith.truncf %29 : vector<8x8xf32> to vector<8x8xbf16>
    %cst_14 = arith.constant dense<0.000000e+00> : vector<8x8xf32>
    %33 = tpu.matmul %31, %32, %cst_14 {dimension_numbers = #tpu.dot_dimension_numbers<[1], [1], [0], [0], [0, 0, 1, 0], [], []>} : vector<8x8xbf16>, vector<8x8xbf16>, vector<8x8xf32> -> vector<8x8xf32>
    %cst_15 = arith.constant 0.353553385 : f32
    %34 = vector.broadcast %cst_15 : f32 to vector<8x8xf32>
    %35 = arith.mulf %33, %34 : vector<8x8xf32>
    %c0_16 = arith.constant 0 : index
    %c0_17 = arith.constant 0 : index
    %c0_18 = arith.constant 0 : index
    %c0_19 = arith.constant 0 : index
    %36 = vector.load %arg8[%c0_16, %c0_17, %c0_18, %c0_19] : memref<1x1x8x8xf32, #tpu.memory_space<vmem>>, vector<1x1x8x8xf32>
    %37 = vector.shape_cast %36 : vector<1x1x8x8xf32> to vector<8x8xf32>
    %38 = arith.addf %35, %37 : vector<8x8xf32>
    %cst_20 = arith.constant -3.40282347E+38 : f32
    %39 = vector.broadcast %cst_20 : f32 to vector<8x8xf32>
    %40 = arith.maximumf %38, %39 : vector<8x8xf32>
    %cst_21 = arith.constant dense<0xFF800000> : vector<8xf32>
    %41 = vector.multi_reduction <maximumf>, %40, %cst_21 [1] : vector<8x8xf32> to vector<8xf32>
    %42 = vector.shape_cast %41 : vector<8xf32> to vector<8x1xf32>
    %43 = vector.broadcast %42 : vector<8x1xf32> to vector<8x8xf32>
    %44 = arith.subf %40, %43 : vector<8x8xf32>
    %45 = math.exp %44 : vector<8x8xf32>
    %cst_22 = arith.constant dense<0.000000e+00> : vector<8xf32>
    %46 = vector.multi_reduction <add>, %45, %cst_22 [1] : vector<8x8xf32> to vector<8xf32>
    %47 = vector.shape_cast %46 : vector<8xf32> to vector<8x1xf32>
    %48 = tpu.reciprocal %47 {approx = true} : vector<8x1xf32> -> vector<8x1xf32>
    %49 = vector.broadcast %48 : vector<8x1xf32> to vector<8x8xf32>
    %50 = arith.mulf %45, %49 : vector<8x8xf32>
    %51 = arith.truncf %50 : vector<8x8xf32> to vector<8x8xbf16>
    %52 = arith.truncf %30 : vector<8x8xf32> to vector<8x8xbf16>
    %cst_23 = arith.constant dense<0.000000e+00> : vector<8x8xf32>
    %53 = tpu.matmul %51, %52, %cst_23 {dimension_numbers = #tpu.dot_dimension_numbers<[1], [0], [0], [1], [0, 0, 1, 1], [], []>} : vector<8x8xbf16>, vector<8x8xbf16>, vector<8x8xf32> -> vector<8x8xf32>
    %54 = arith.truncf %53 : vector<8x8xf32> to vector<8x8xbf16>
    %c0_24 = arith.constant 0 : index
    %c0_25 = arith.constant 0 : index
    %55 = vector.load %arg12[%c0_24, %c0_25] : memref<8x32xbf16, #tpu.memory_space<vmem>>, vector<8x8xbf16>
    tpu.vector_store %arg12[%c0_24, %c0_25], %54 {strides = array<i32>} : memref<8x32xbf16, #tpu.memory_space<vmem>>, vector<8x8xbf16>,
    %c0_26 = arith.constant 0 : index
    %c0_27 = arith.constant 0 : index
    %c0_28 = arith.constant 0 : index
    %56 = vector.load %arg10[%c0_26, %c0_27, %c0_28] : memref<1x8x32xf32, #tpu.memory_space<vmem>>, vector<1x8x8xf32>
    %57 = vector.shape_cast %56 : vector<1x8x8xf32> to vector<8x8xf32>
    %58 = vector.shape_cast %29 : vector<8x8xf32> to vector<1x8x8xf32>
    tpu.vector_store %arg10[%c0_26, %c0_27, %c0_28], %58 {strides = array<i32>} : memref<1x8x32xf32, #tpu.memory_space<vmem>>, vector<1x8x8xf32>,
    %c0_29 = arith.constant 0 : index
    %c0_30 = arith.constant 0 : index
    %c0_31 = arith.constant 0 : index
    %59 = vector.load %arg11[%c0_29, %c0_30, %c0_31] : memref<1x8x32xf32, #tpu.memory_space<vmem>>, vector<1x8x8xf32>
    %60 = vector.shape_cast %59 : vector<1x8x8xf32> to vector<8x8xf32>
    %61 = vector.shape_cast %30 : vector<8x8xf32> to vector<1x8x8xf32>
    tpu.vector_store %arg11[%c0_29, %c0_30, %c0_31], %61 {strides = array<i32>} : memref<1x8x32xf32, #tpu.memory_space<vmem>>, vector<1x8x8xf32>,
    %62 = vector.extract_strided_slice %7 {offsets = [0, 8], sizes = [8, 8], strides = [1, 1]} : vector<8x96xf32> to vector<8x8xf32>
    %63 = vector.extract_strided_slice %62 {offsets = [0, 4], sizes = [8, 4], strides = [1, 1]} : vector<8x8xf32> to vector<8x4xf32>
    %cst_32 = arith.constant 0.000000e+00 : f32
    %64 = vector.broadcast %cst_32 : f32 to vector<8x4xf32>
    %65 = arith.subf %64, %63 : vector<8x4xf32>
    %66 = vector.extract_strided_slice %62 {offsets = [0, 0], sizes = [8, 4], strides = [1, 1]} : vector<8x8xf32> to vector<8x4xf32>
    %67 = tpu.concatenate %65, %66 in 1 : vector<8x4xf32>, vector<8x4xf32> -> vector<8x8xf32>
    %68 = arith.mulf %62, %9 : vector<8x8xf32>
    %69 = arith.mulf %67, %11 : vector<8x8xf32>
    %70 = arith.addf %68, %69 : vector<8x8xf32>
    %71 = vector.extract_strided_slice %7 {offsets = [0, 40], sizes = [8, 8], strides = [1, 1]} : vector<8x96xf32> to vector<8x8xf32>
    %72 = vector.extract_strided_slice %71 {offsets = [0, 4], sizes = [8, 4], strides = [1, 1]} : vector<8x8xf32> to vector<8x4xf32>
    %cst_33 = arith.constant 0.000000e+00 : f32
    %73 = vector.broadcast %cst_33 : f32 to vector<8x4xf32>
    %74 = arith.subf %73, %72 : vector<8x4xf32>
    %75 = vector.extract_strided_slice %71 {offsets = [0, 0], sizes = [8, 4], strides = [1, 1]} : vector<8x8xf32> to vector<8x4xf32>
    %76 = tpu.concatenate %74, %75 in 1 : vector<8x4xf32>, vector<8x4xf32> -> vector<8x8xf32>
    %77 = arith.mulf %71, %9 : vector<8x8xf32>
    %78 = arith.mulf %76, %11 : vector<8x8xf32>
    %79 = arith.addf %77, %78 : vector<8x8xf32>
    %80 = vector.extract_strided_slice %7 {offsets = [0, 72], sizes = [8, 8], strides = [1, 1]} : vector<8x96xf32> to vector<8x8xf32>
    %81 = arith.truncf %70 : vector<8x8xf32> to vector<8x8xbf16>
    %82 = arith.truncf %79 : vector<8x8xf32> to vector<8x8xbf16>
    %cst_34 = arith.constant dense<0.000000e+00> : vector<8x8xf32>
    %83 = tpu.matmul %81, %82, %cst_34 {dimension_numbers = #tpu.dot_dimension_numbers<[1], [1], [0], [0], [0, 0, 1, 0], [], []>} : vector<8x8xbf16>, vector<8x8xbf16>, vector<8x8xf32> -> vector<8x8xf32>
    %cst_35 = arith.constant 0.353553385 : f32
    %84 = vector.broadcast %cst_35 : f32 to vector<8x8xf32>
    %85 = arith.mulf %83, %84 : vector<8x8xf32>
    %c0_36 = arith.constant 0 : index
    %c0_37 = arith.constant 0 : index
    %c0_38 = arith.constant 0 : index
    %c0_39 = arith.constant 0 : index
    %86 = vector.load %arg8[%c0_36, %c0_37, %c0_38, %c0_39] : memref<1x1x8x8xf32, #tpu.memory_space<vmem>>, vector<1x1x8x8xf32>
    %87 = vector.shape_cast %86 : vector<1x1x8x8xf32> to vector<8x8xf32>
    %88 = arith.addf %85, %87 : vector<8x8xf32>
    %cst_40 = arith.constant -3.40282347E+38 : f32
    %89 = vector.broadcast %cst_40 : f32 to vector<8x8xf32>
    %90 = arith.maximumf %88, %89 : vector<8x8xf32>
    %cst_41 = arith.constant dense<0xFF800000> : vector<8xf32>
    %91 = vector.multi_reduction <maximumf>, %90, %cst_41 [1] : vector<8x8xf32> to vector<8xf32>
    %92 = vector.shape_cast %91 : vector<8xf32> to vector<8x1xf32>
    %93 = vector.broadcast %92 : vector<8x1xf32> to vector<8x8xf32>
    %94 = arith.subf %90, %93 : vector<8x8xf32>
    %95 = math.exp %94 : vector<8x8xf32>
    %cst_42 = arith.constant dense<0.000000e+00> : vector<8xf32>
    %96 = vector.multi_reduction <add>, %95, %cst_42 [1] : vector<8x8xf32> to vector<8xf32>
    %97 = vector.shape_cast %96 : vector<8xf32> to vector<8x1xf32>
    %98 = tpu.reciprocal %97 {approx = true} : vector<8x1xf32> -> vector<8x1xf32>
    %99 = vector.broadcast %98 : vector<8x1xf32> to vector<8x8xf32>
    %100 = arith.mulf %95, %99 : vector<8x8xf32>
    %101 = arith.truncf %100 : vector<8x8xf32> to vector<8x8xbf16>
    %102 = arith.truncf %80 : vector<8x8xf32> to vector<8x8xbf16>
    %cst_43 = arith.constant dense<0.000000e+00> : vector<8x8xf32>
    %103 = tpu.matmul %101, %102, %cst_43 {dimension_numbers = #tpu.dot_dimension_numbers<[1], [0], [0], [1], [0, 0, 1, 1], [], []>} : vector<8x8xbf16>, vector<8x8xbf16>, vector<8x8xf32> -> vector<8x8xf32>
    %104 = arith.truncf %103 : vector<8x8xf32> to vector<8x8xbf16>
    %c0_44 = arith.constant 0 : index
    %c8 = arith.constant 8 : index
    %105 = vector.load %arg12[%c0_44, %c8] : memref<8x32xbf16, #tpu.memory_space<vmem>>, vector<8x8xbf16>
    tpu.vector_store %arg12[%c0_44, %c8], %104 {strides = array<i32>} : memref<8x32xbf16, #tpu.memory_space<vmem>>, vector<8x8xbf16>,
    %c0_45 = arith.constant 0 : index
    %c0_46 = arith.constant 0 : index
    %c8_47 = arith.constant 8 : index
    %106 = vector.load %arg10[%c0_45, %c0_46, %c8_47] : memref<1x8x32xf32, #tpu.memory_space<vmem>>, vector<1x8x8xf32>
    %107 = vector.shape_cast %106 : vector<1x8x8xf32> to vector<8x8xf32>
    %108 = vector.shape_cast %79 : vector<8x8xf32> to vector<1x8x8xf32>
    tpu.vector_store %arg10[%c0_45, %c0_46, %c8_47], %108 {strides = array<i32>} : memref<1x8x32xf32, #tpu.memory_space<vmem>>, vector<1x8x8xf32>,
    %c0_48 = arith.constant 0 : index
    %c0_49 = arith.constant 0 : index
    %c8_50 = arith.constant 8 : index
    %109 = vector.load %arg11[%c0_48, %c0_49, %c8_50] : memref<1x8x32xf32, #tpu.memory_space<vmem>>, vector<1x8x8xf32>
    %110 = vector.shape_cast %109 : vector<1x8x8xf32> to vector<8x8xf32>
    %111 = vector.shape_cast %80 : vector<8x8xf32> to vector<1x8x8xf32>
    tpu.vector_store %arg11[%c0_48, %c0_49, %c8_50], %111 {strides = array<i32>} : memref<1x8x32xf32, #tpu.memory_space<vmem>>, vector<1x8x8xf32>,
    %112 = vector.extract_strided_slice %7 {offsets = [0, 16], sizes = [8, 8], strides = [1, 1]} : vector<8x96xf32> to vector<8x8xf32>
    %113 = vector.extract_strided_slice %112 {offsets = [0, 4], sizes = [8, 4], strides = [1, 1]} : vector<8x8xf32> to vector<8x4xf32>
    %cst_51 = arith.constant 0.000000e+00 : f32
    %114 = vector.broadcast %cst_51 : f32 to vector<8x4xf32>
    %115 = arith.subf %114, %113 : vector<8x4xf32>
    %116 = vector.extract_strided_slice %112 {offsets = [0, 0], sizes = [8, 4], strides = [1, 1]} : vector<8x8xf32> to vector<8x4xf32>
    %117 = tpu.concatenate %115, %116 in 1 : vector<8x4xf32>, vector<8x4xf32> -> vector<8x8xf32>
    %118 = arith.mulf %112, %9 : vector<8x8xf32>
    %119 = arith.mulf %117, %11 : vector<8x8xf32>
    %120 = arith.addf %118, %119 : vector<8x8xf32>
    %121 = vector.extract_strided_slice %7 {offsets = [0, 48], sizes = [8, 8], strides = [1, 1]} : vector<8x96xf32> to vector<8x8xf32>
    %122 = vector.extract_strided_slice %121 {offsets = [0, 4], sizes = [8, 4], strides = [1, 1]} : vector<8x8xf32> to vector<8x4xf32>
    %cst_52 = arith.constant 0.000000e+00 : f32
    %123 = vector.broadcast %cst_52 : f32 to vector<8x4xf32>
    %124 = arith.subf %123, %122 : vector<8x4xf32>
    %125 = vector.extract_strided_slice %121 {offsets = [0, 0], sizes = [8, 4], strides = [1, 1]} : vector<8x8xf32> to vector<8x4xf32>
    %126 = tpu.concatenate %124, %125 in 1 : vector<8x4xf32>, vector<8x4xf32> -> vector<8x8xf32>
    %127 = arith.mulf %121, %9 : vector<8x8xf32>
    %128 = arith.mulf %126, %11 : vector<8x8xf32>
    %129 = arith.addf %127, %128 : vector<8x8xf32>
    %130 = vector.extract_strided_slice %7 {offsets = [0, 80], sizes = [8, 8], strides = [1, 1]} : vector<8x96xf32> to vector<8x8xf32>
    %131 = arith.truncf %120 : vector<8x8xf32> to vector<8x8xbf16>
    %132 = arith.truncf %129 : vector<8x8xf32> to vector<8x8xbf16>
    %cst_53 = arith.constant dense<0.000000e+00> : vector<8x8xf32>
    %133 = tpu.matmul %131, %132, %cst_53 {dimension_numbers = #tpu.dot_dimension_numbers<[1], [1], [0], [0], [0, 0, 1, 0], [], []>} : vector<8x8xbf16>, vector<8x8xbf16>, vector<8x8xf32> -> vector<8x8xf32>
    %cst_54 = arith.constant 0.353553385 : f32
    %134 = vector.broadcast %cst_54 : f32 to vector<8x8xf32>
    %135 = arith.mulf %133, %134 : vector<8x8xf32>
    %c0_55 = arith.constant 0 : index
    %c0_56 = arith.constant 0 : index
    %c0_57 = arith.constant 0 : index
    %c0_58 = arith.constant 0 : index
    %136 = vector.load %arg8[%c0_55, %c0_56, %c0_57, %c0_58] : memref<1x1x8x8xf32, #tpu.memory_space<vmem>>, vector<1x1x8x8xf32>
    %137 = vector.shape_cast %136 : vector<1x1x8x8xf32> to vector<8x8xf32>
    %138 = arith.addf %135, %137 : vector<8x8xf32>
    %cst_59 = arith.constant -3.40282347E+38 : f32
    %139 = vector.broadcast %cst_59 : f32 to vector<8x8xf32>
    %140 = arith.maximumf %138, %139 : vector<8x8xf32>
    %cst_60 = arith.constant dense<0xFF800000> : vector<8xf32>
    %141 = vector.multi_reduction <maximumf>, %140, %cst_60 [1] : vector<8x8xf32> to vector<8xf32>
    %142 = vector.shape_cast %141 : vector<8xf32> to vector<8x1xf32>
    %143 = vector.broadcast %142 : vector<8x1xf32> to vector<8x8xf32>
    %144 = arith.subf %140, %143 : vector<8x8xf32>
    %145 = math.exp %144 : vector<8x8xf32>
    %cst_61 = arith.constant dense<0.000000e+00> : vector<8xf32>
    %146 = vector.multi_reduction <add>, %145, %cst_61 [1] : vector<8x8xf32> to vector<8xf32>
    %147 = vector.shape_cast %146 : vector<8xf32> to vector<8x1xf32>
    %148 = tpu.reciprocal %147 {approx = true} : vector<8x1xf32> -> vector<8x1xf32>
    %149 = vector.broadcast %148 : vector<8x1xf32> to vector<8x8xf32>
    %150 = arith.mulf %145, %149 : vector<8x8xf32>
    %151 = arith.truncf %150 : vector<8x8xf32> to vector<8x8xbf16>
    %152 = arith.truncf %130 : vector<8x8xf32> to vector<8x8xbf16>
    %cst_62 = arith.constant dense<0.000000e+00> : vector<8x8xf32>
    %153 = tpu.matmul %151, %152, %cst_62 {dimension_numbers = #tpu.dot_dimension_numbers<[1], [0], [0], [1], [0, 0, 1, 1], [], []>} : vector<8x8xbf16>, vector<8x8xbf16>, vector<8x8xf32> -> vector<8x8xf32>
    %154 = arith.truncf %153 : vector<8x8xf32> to vector<8x8xbf16>
    %c0_63 = arith.constant 0 : index
    %c16 = arith.constant 16 : index
    %155 = vector.load %arg12[%c0_63, %c16] : memref<8x32xbf16, #tpu.memory_space<vmem>>, vector<8x8xbf16>
    tpu.vector_store %arg12[%c0_63, %c16], %154 {strides = array<i32>} : memref<8x32xbf16, #tpu.memory_space<vmem>>, vector<8x8xbf16>,
    %c0_64 = arith.constant 0 : index
    %c0_65 = arith.constant 0 : index
    %c16_66 = arith.constant 16 : index
    %156 = vector.load %arg10[%c0_64, %c0_65, %c16_66] : memref<1x8x32xf32, #tpu.memory_space<vmem>>, vector<1x8x8xf32>
    %157 = vector.shape_cast %156 : vector<1x8x8xf32> to vector<8x8xf32>
    %158 = vector.shape_cast %129 : vector<8x8xf32> to vector<1x8x8xf32>
    tpu.vector_store %arg10[%c0_64, %c0_65, %c16_66], %158 {strides = array<i32>} : memref<1x8x32xf32, #tpu.memory_space<vmem>>, vector<1x8x8xf32>,
    %c0_67 = arith.constant 0 : index
    %c0_68 = arith.constant 0 : index
    %c16_69 = arith.constant 16 : index
    %159 = vector.load %arg11[%c0_67, %c0_68, %c16_69] : memref<1x8x32xf32, #tpu.memory_space<vmem>>, vector<1x8x8xf32>
    %160 = vector.shape_cast %159 : vector<1x8x8xf32> to vector<8x8xf32>
    %161 = vector.shape_cast %130 : vector<8x8xf32> to vector<1x8x8xf32>
    tpu.vector_store %arg11[%c0_67, %c0_68, %c16_69], %161 {strides = array<i32>} : memref<1x8x32xf32, #tpu.memory_space<vmem>>, vector<1x8x8xf32>,
    %162 = vector.extract_strided_slice %7 {offsets = [0, 24], sizes = [8, 8], strides = [1, 1]} : vector<8x96xf32> to vector<8x8xf32>
    %163 = vector.extract_strided_slice %162 {offsets = [0, 4], sizes = [8, 4], strides = [1, 1]} : vector<8x8xf32> to vector<8x4xf32>
    %cst_70 = arith.constant 0.000000e+00 : f32
    %164 = vector.broadcast %cst_70 : f32 to vector<8x4xf32>
    %165 = arith.subf %164, %163 : vector<8x4xf32>
    %166 = vector.extract_strided_slice %162 {offsets = [0, 0], sizes = [8, 4], strides = [1, 1]} : vector<8x8xf32> to vector<8x4xf32>
    %167 = tpu.concatenate %165, %166 in 1 : vector<8x4xf32>, vector<8x4xf32> -> vector<8x8xf32>
    %168 = arith.mulf %162, %9 : vector<8x8xf32>
    %169 = arith.mulf %167, %11 : vector<8x8xf32>
    %170 = arith.addf %168, %169 : vector<8x8xf32>
    %171 = vector.extract_strided_slice %7 {offsets = [0, 56], sizes = [8, 8], strides = [1, 1]} : vector<8x96xf32> to vector<8x8xf32>
    %172 = vector.extract_strided_slice %171 {offsets = [0, 4], sizes = [8, 4], strides = [1, 1]} : vector<8x8xf32> to vector<8x4xf32>
    %cst_71 = arith.constant 0.000000e+00 : f32
    %173 = vector.broadcast %cst_71 : f32 to vector<8x4xf32>
    %174 = arith.subf %173, %172 : vector<8x4xf32>
    %175 = vector.extract_strided_slice %171 {offsets = [0, 0], sizes = [8, 4], strides = [1, 1]} : vector<8x8xf32> to vector<8x4xf32>
    %176 = tpu.concatenate %174, %175 in 1 : vector<8x4xf32>, vector<8x4xf32> -> vector<8x8xf32>
    %177 = arith.mulf %171, %9 : vector<8x8xf32>
    %178 = arith.mulf %176, %11 : vector<8x8xf32>
    %179 = arith.addf %177, %178 : vector<8x8xf32>
    %180 = vector.extract_strided_slice %7 {offsets = [0, 88], sizes = [8, 8], strides = [1, 1]} : vector<8x96xf32> to vector<8x8xf32>
    %181 = arith.truncf %170 : vector<8x8xf32> to vector<8x8xbf16>
    %182 = arith.truncf %179 : vector<8x8xf32> to vector<8x8xbf16>
    %cst_72 = arith.constant dense<0.000000e+00> : vector<8x8xf32>
    %183 = tpu.matmul %181, %182, %cst_72 {dimension_numbers = #tpu.dot_dimension_numbers<[1], [1], [0], [0], [0, 0, 1, 0], [], []>} : vector<8x8xbf16>, vector<8x8xbf16>, vector<8x8xf32> -> vector<8x8xf32>
    %cst_73 = arith.constant 0.353553385 : f32
    %184 = vector.broadcast %cst_73 : f32 to vector<8x8xf32>
    %185 = arith.mulf %183, %184 : vector<8x8xf32>
    %c0_74 = arith.constant 0 : index
    %c0_75 = arith.constant 0 : index
    %c0_76 = arith.constant 0 : index
    %c0_77 = arith.constant 0 : index
    %186 = vector.load %arg8[%c0_74, %c0_75, %c0_76, %c0_77] : memref<1x1x8x8xf32, #tpu.memory_space<vmem>>, vector<1x1x8x8xf32>
    %187 = vector.shape_cast %186 : vector<1x1x8x8xf32> to vector<8x8xf32>
    %188 = arith.addf %185, %187 : vector<8x8xf32>
    %cst_78 = arith.constant -3.40282347E+38 : f32
    %189 = vector.broadcast %cst_78 : f32 to vector<8x8xf32>
    %190 = arith.maximumf %188, %189 : vector<8x8xf32>
    %cst_79 = arith.constant dense<0xFF800000> : vector<8xf32>
    %191 = vector.multi_reduction <maximumf>, %190, %cst_79 [1] : vector<8x8xf32> to vector<8xf32>
    %192 = vector.shape_cast %191 : vector<8xf32> to vector<8x1xf32>
    %193 = vector.broadcast %192 : vector<8x1xf32> to vector<8x8xf32>
    %194 = arith.subf %190, %193 : vector<8x8xf32>
    %195 = math.exp %194 : vector<8x8xf32>
    %cst_80 = arith.constant dense<0.000000e+00> : vector<8xf32>
    %196 = vector.multi_reduction <add>, %195, %cst_80 [1] : vector<8x8xf32> to vector<8xf32>
    %197 = vector.shape_cast %196 : vector<8xf32> to vector<8x1xf32>
    %198 = tpu.reciprocal %197 {approx = true} : vector<8x1xf32> -> vector<8x1xf32>
    %199 = vector.broadcast %198 : vector<8x1xf32> to vector<8x8xf32>
    %200 = arith.mulf %195, %199 : vector<8x8xf32>
    %201 = arith.truncf %200 : vector<8x8xf32> to vector<8x8xbf16>
    %202 = arith.truncf %180 : vector<8x8xf32> to vector<8x8xbf16>
    %cst_81 = arith.constant dense<0.000000e+00> : vector<8x8xf32>
    %203 = tpu.matmul %201, %202, %cst_81 {dimension_numbers = #tpu.dot_dimension_numbers<[1], [0], [0], [1], [0, 0, 1, 1], [], []>} : vector<8x8xbf16>, vector<8x8xbf16>, vector<8x8xf32> -> vector<8x8xf32>
    %204 = arith.truncf %203 : vector<8x8xf32> to vector<8x8xbf16>
    %c0_82 = arith.constant 0 : index
    %c24 = arith.constant 24 : index
    %205 = vector.load %arg12[%c0_82, %c24] : memref<8x32xbf16, #tpu.memory_space<vmem>>, vector<8x8xbf16>
    tpu.vector_store %arg12[%c0_82, %c24], %204 {strides = array<i32>} : memref<8x32xbf16, #tpu.memory_space<vmem>>, vector<8x8xbf16>,
    %c0_83 = arith.constant 0 : index
    %c0_84 = arith.constant 0 : index
    %c24_85 = arith.constant 24 : index
    %206 = vector.load %arg10[%c0_83, %c0_84, %c24_85] : memref<1x8x32xf32, #tpu.memory_space<vmem>>, vector<1x8x8xf32>
    %207 = vector.shape_cast %206 : vector<1x8x8xf32> to vector<8x8xf32>
    %208 = vector.shape_cast %179 : vector<8x8xf32> to vector<1x8x8xf32>
    tpu.vector_store %arg10[%c0_83, %c0_84, %c24_85], %208 {strides = array<i32>} : memref<1x8x32xf32, #tpu.memory_space<vmem>>, vector<1x8x8xf32>,
    %c0_86 = arith.constant 0 : index
    %c0_87 = arith.constant 0 : index
    %c24_88 = arith.constant 24 : index
    %209 = vector.load %arg11[%c0_86, %c0_87, %c24_88] : memref<1x8x32xf32, #tpu.memory_space<vmem>>, vector<1x8x8xf32>
    %210 = vector.shape_cast %209 : vector<1x8x8xf32> to vector<8x8xf32>
    %211 = vector.shape_cast %180 : vector<8x8xf32> to vector<1x8x8xf32>
    tpu.vector_store %arg11[%c0_86, %c0_87, %c24_88], %211 {strides = array<i32>} : memref<1x8x32xf32, #tpu.memory_space<vmem>>, vector<1x8x8xf32>,
    %c0_89 = arith.constant 0 : index
    %c0_90 = arith.constant 0 : index
    %212 = vector.load %arg12[%c0_89, %c0_90] : memref<8x32xbf16, #tpu.memory_space<vmem>>, vector<8x32xbf16>
    %c0_91 = arith.constant 0 : index
    %c0_92 = arith.constant 0 : index
    %213 = vector.load %arg4[%c0_91, %c0_92] : memref<32x32xbf16, #tpu.memory_space<vmem>>, vector<32x32xbf16>
    %cst_93 = arith.constant dense<0.000000e+00> : vector<8x32xf32>
    %214 = tpu.matmul %212, %213, %cst_93 {dimension_numbers = #tpu.dot_dimension_numbers<[1], [0], [0], [1], [0, 0, 1, 1], [], []>} : vector<8x32xbf16>, vector<32x32xbf16>, vector<8x32xf32> -> vector<8x32xf32>
    %c0_94 = arith.constant 0 : index
    %c0_95 = arith.constant 0 : index
    %215 = vector.load %arg5[%c0_94, %c0_95] : memref<1x32xf32, #tpu.memory_space<vmem>>, vector<1x32xf32>
    %216 = vector.broadcast %215 : vector<1x32xf32> to vector<8x32xf32>
    %217 = arith.addf %214, %216 : vector<8x32xf32>
    %c0_96 = arith.constant 0 : index
    %c0_97 = arith.constant 0 : index
    %c0_98 = arith.constant 0 : index
    %218 = vector.load %arg9[%c0_96, %c0_97, %c0_98] : memref<1x8x32xf32, #tpu.memory_space<vmem>>, vector<1x8x32xf32>
    %219 = vector.shape_cast %218 : vector<1x8x32xf32> to vector<8x32xf32>
    %220 = vector.shape_cast %217 : vector<8x32xf32> to vector<1x8x32xf32>
    tpu.vector_store %arg9[%c0_96, %c0_97, %c0_98], %220 {strides = array<i32>} : memref<1x8x32xf32, #tpu.memory_space<vmem>>, vector<1x8x32xf32>,
    return
  }
  func.func @transform_0(%arg0: i32) -> (i32, i32, i32) {
    %c0_i32 = arith.constant 0 : i32
    %c0_i32_0 = arith.constant 0 : i32
    %c0_i32_1 = arith.constant 0 : i32
    return %arg0, %c0_i32, %c0_i32_0 : i32, i32, i32
  }
  func.func @transform_1(%arg0: i32) -> (i32, i32) {
    %c0_i32 = arith.constant 0 : i32
    %c0_i32_0 = arith.constant 0 : i32
    %c0_i32_1 = arith.constant 0 : i32
    return %c0_i32, %c0_i32_0 : i32, i32
  }
  func.func @transform_2(%arg0: i32) -> (i32, i32) {
    %c0_i32 = arith.constant 0 : i32
    %c0_i32_0 = arith.constant 0 : i32
    %c0_i32_1 = arith.constant 0 : i32
    return %c0_i32, %c0_i32_0 : i32, i32
  }
  func.func @transform_3(%arg0: i32) -> (i32, i32) {
    %c0_i32 = arith.constant 0 : i32
    %c0_i32_0 = arith.constant 0 : i32
    %c0_i32_1 = arith.constant 0 : i32
    return %c0_i32, %c0_i32_0 : i32, i32
  }
  func.func @transform_4(%arg0: i32) -> (i32, i32) {
    %c0_i32 = arith.constant 0 : i32
    %c0_i32_0 = arith.constant 0 : i32
    %c0_i32_1 = arith.constant 0 : i32
    return %c0_i32, %c0_i32_0 : i32, i32
  }
  func.func @transform_5(%arg0: i32) -> (i32, i32, i32) {
    %c0_i32 = arith.constant 0 : i32
    %c0_i32_0 = arith.constant 0 : i32
    %c0_i32_1 = arith.constant 0 : i32
    %c0_i32_2 = arith.constant 0 : i32
    return %c0_i32, %c0_i32_0, %c0_i32_1 : i32, i32, i32
  }
  func.func @transform_6(%arg0: i32) -> (i32, i32, i32) {
    %c0_i32 = arith.constant 0 : i32
    %c0_i32_0 = arith.constant 0 : i32
    %c0_i32_1 = arith.constant 0 : i32
    %c0_i32_2 = arith.constant 0 : i32
    return %c0_i32, %c0_i32_0, %c0_i32_1 : i32, i32, i32
  }
  func.func @transform_7(%arg0: i32) -> (i32, i32, i32, i32) {
    %c0_i32 = arith.constant 0 : i32
    %c0_i32_0 = arith.constant 0 : i32
    %c0_i32_1 = arith.constant 0 : i32
    %c0_i32_2 = arith.constant 0 : i32
    %c0_i32_3 = arith.constant 0 : i32
    return %c0_i32, %c0_i32_0, %c0_i32_1, %c0_i32_2 : i32, i32, i32, i32
  }
  func.func @transform_8(%arg0: i32) -> (i32, i32, i32) {
    %c0_i32 = arith.constant 0 : i32
    %c0_i32_0 = arith.constant 0 : i32
    %c0_i32_1 = arith.constant 0 : i32
    return %arg0, %c0_i32, %c0_i32_0 : i32, i32, i32
  }
  func.func @transform_9(%arg0: i32) -> (i32, i32, i32) {
    %c0_i32 = arith.constant 0 : i32
    %c0_i32_0 = arith.constant 0 : i32
    %c0_i32_1 = arith.constant 0 : i32
    return %arg0, %c0_i32, %c0_i32_0 : i32, i32, i32
  }
  func.func @transform_10(%arg0: i32) -> (i32, i32, i32) {
    %c0_i32 = arith.constant 0 : i32
    %c0_i32_0 = arith.constant 0 : i32
    %c0_i32_1 = arith.constant 0 : i32
    return %arg0, %c0_i32, %c0_i32_0 : i32, i32, i32
  }
}

</mosaic_0001>

<bundles_post_ra>
// kernel: tpu_custom_call.1
= control target key start
LH: loop header
LB: loop body
LE: loop exit
PB: predicated region body
PF: predicated region fallthrough
CT: control target
= control target key end

     0   :  { %s2474_s0 = inlined_call_operand.hbm [shape: f32[2,8,32], index: 0, kind: input, shape index: {}]   ;;  %s2475_s1 = inlined_call_operand.hbm [shape: bf16[32,96], index: 1, kind: input, shape index: {}]   ;;  %s2476_s2 = inlined_call_operand.vmem [shape: f32[1,96], index: 2, kind: input, shape index: {}]   ;;  %s2477_s3 = inlined_call_operand.hbm [shape: bf16[32,32], index: 3, kind: input, shape index: {}]   ;;  %s2478_s4 = inlined_call_operand.vmem [shape: f32[1,32], index: 4, kind: input, shape index: {}]   ;;  %s2479_s5 = inlined_call_operand.vmem [shape: f32[1,8,8], index: 5, kind: input, shape index: {}]   ;;  %s2480_s6 = inlined_call_operand.vmem [shape: f32[1,8,8], index: 6, kind: input, shape index: {}]   ;;  %s2481_s7 = inlined_call_operand.vmem [shape: f32[1,1,8,8], index: 7, kind: input, shape index: {}]   ;;  %s2482_s8 = inlined_call_operand.hbm [shape: f32[2,8,32], index: 8, kind: output, shape index: {0}]   ;;  %s2483_s9 = inlined_call_operand.hbm [shape: f32[2,8,32], index: 9, kind: output, shape index: {1}]   ;;  %s2484_s10 = inlined_call_operand.hbm [shape: f32[2,8,32], index: 10, kind: output, shape index: {2}]  }
   0x1   :  { %2491 = sst [smem:[#allocation19_spill]] %s2474_s0 }
   0x2   :  { %16 = vsyncpa [#allocation4], 0 }
   0x3   :  { %18 = vsyncpa [#allocation4 + $0x1], 0 }
   0x4   :  { %19 = vsyncpa [#allocation7], 0 }
   0x5   :  { %20 = vsyncpa [#allocation5], 0 }
   0x6   :  { %22 = vsyncpa [#allocation5 + $0x1], 0 }
   0x7   :  { %23 = vsyncpa [#allocation11], 0 }
   0x8   :  { %25 = vsyncpa [#allocation11 + $0x1], 0  ;;  %s1991_s13 = smov 0   ;;  %s1993_s14 = smov 0  }
   0x9   :  { %s1995_s15 = smov 0   ;;  %s1997_s16 = smov 0  }
   0xa LB: > { %2492 = sst [smem:[#allocation17_spill]] %s1888_s13  ;;  %s2012_s17 = sadd.s32 4294967295, %s1900_s16   ;;  %s1900_s16 = sphi %s1997_s16, %s2514_s16   ;;  %s1896_s15 = sphi %s1995_s15, %s2513_s15   ;;  %s1892_s14 = sphi %s1993_s14, %s2512_s14   ;;  %s1888_s13 = sphi %s1991_s13, %s2511_s13  }
   0xb   : > { %s2486_s18 = sadd.s32 4294967294, %s1900_s16   ;;  %p51_p0 = scmp.ne.s32.totalorder %s1892_s14, %s1888_s13 }
   0xc   : > { %p2485_p1 = scmp.eq.s32.totalorder %s2012_s17, 0  ;;  %p228_p3 = scmp.eq.s32.totalorder %s2486_s18, 1 }
   0xd   : > { %p1430_p5 = scmp.ge.s32.totalorder %s1900_s16, 1  ;;  %p287_p7 = scmp.lt.s32.totalorder %s1900_s16, 3 }
   0xe   : > { %p2023_p4 = por %p2485_p1, %p51_p0  ;;  %p2028_p6 = por %p228_p3, %p51_p0 }
   0xf   : > { %p2033_p8 = pnand %p1430_p5, %p287_p7  ;;  %s1902_s22 = smov [#allocation6]  }
  0x10   : > { %s2493_s19 = scalar_select %p2023_p4, 1, 0 }
  0x11   : > { %s2494_s20 = scalar_select %p2028_p6, 1, 0 }
  0x12   : > { %s299_s23 = sshll.u32 %s1902_s22, 4  ;;  %p1575_p9 = pneg %p2033_p8  ;;  %s2037_s23 = int_to_ptr.vmem [resolvable:$true] %s299_s23 }
  0x13   : > { %2495 = sst [smem:[#allocation18_spill]] %s2494_s20  ;;  %s1903_s25 = smov [#allocation8]  }
  0x14   : > { %p2044_p11 = pnand %p1575_p9, %p2485_p1  ;;  %s315_s26 = sshll.u32 %s1903_s25, 4  ;;  %s2048_s26 = int_to_ptr.vmem [resolvable:$true] %s315_s26 }
  0x15   : > { %s1684_s29 = scalar_lea.hbm %s2475_s1, 256 }
  0x16   : > { %p1685_p12 = scmp.ne.s32.totalorder %s2475_s1, %s1684_s29  ;;  %p1686_p13 = pneg %p2044_p11 }
  0x17   : > { %p1691_p5 = scmp.lt.u32.totalorder %s1684_s29, %s2475_s1 }
  0x18   : > { %p1687_p0 = pnand %p1686_p13, %p1685_p12 }
  0x1a   : > { %p1688_p3 = pneg %p1687_p0 }
  0x1c   : > { %p1693_p7 = pnand %p1691_p5, %p1688_p3 }
  0x1e   : > { %1696 = shalt.err (!%p1693_p7)
}
  0x1f   : > { %s1697_s25 = scalar_lea.vmem %s2037_s23, 256  ;;  %p1705_p2 = scmp.lt.s32.totalorder %s2037_s23, %s2037_s23 }
  0x20   : > { %p1698_p9 = scmp.ne.s32.totalorder %s2037_s23, %s1697_s25  ;;  %p1706_p12 = scmp.lt.s32.totalorder %s1697_s25, %s1697_s25 }
  0x22   : > { %p1700_p10 = pnand %p1698_p9, %p1686_p13  ;;  %p1707_p0 = por %p1706_p12, %p1705_p2 }
  0x24   : > { %p1701_p1 = pneg %p1700_p10 }
  0x26   : > { %p1708_p6 = pnand %p1707_p0, %p1701_p1 }
  0x28   : > { %1711 = shalt.err (!%p1708_p6)
}
  0x29   : > { %s1904_s27 = smov 64   ;;  %s1905_s28 = smov 4  }
  0x2a   : > { %1578 = dma.hbm_to_vmem [thread:$0]  (!%p2044_p11), %s2475_s1, 256, %s2037_s23, [#allocation7], %s1904_s27, %s1904_s27, %s1905_s28  }
  0x2b   : > { %s1712_s22 = scalar_lea.hbm %s2477_s3, 256 }
  0x2c   : > { %p1713_p2 = scmp.ne.s32.totalorder %s2477_s3, %s1712_s22  ;;  %p1719_p10 = scmp.lt.u32.totalorder %s1712_s22, %s2477_s3 }
  0x2e   : > { %p1715_p1 = pnand %p1713_p2, %p1686_p13 }
  0x30   : > { %p1716_p6 = pneg %p1715_p1 }
  0x32   : > { %p1721_p3 = pnand %p1719_p10, %p1716_p6 }
  0x34   : > { %1724 = shalt.err (!%p1721_p3)
}
  0x35   : > { %s1725_s23 = scalar_lea.vmem %s2048_s26, 256  ;;  %p1733_p12 = scmp.lt.s32.totalorder %s2048_s26, %s2048_s26 }
  0x36   : > { %p1726_p5 = scmp.ne.s32.totalorder %s2048_s26, %s1725_s23  ;;  %p1734_p0 = scmp.lt.s32.totalorder %s1725_s23, %s1725_s23 }
  0x38   : > { %p1728_p7 = pnand %p1726_p5, %p1686_p13  ;;  %p1735_p2 = por %p1734_p0, %p1733_p12 }
  0x3a   : > { %p1729_p9 = pneg %p1728_p7 }
  0x3c   : > { %p1736_p1 = pnand %p1735_p2, %p1729_p9 }
  0x3e   : > { %1739 = shalt.err (!%p1736_p1)
}
  0x3f   : > { %1581 = dma.hbm_to_vmem [thread:$0]  (!%p2044_p11), %s2477_s3, 256, %s2048_s26, [#allocation7], %s1904_s27, %s1904_s27, %s1905_s28  }
  0x40   : > { %s2103_s20 = sadd.s32 1, %s1900_s16   ;;  %s38_s24 = sadd.s32 1, %s1896_s15 }
  0x41   : > { %s35_s29 = ssub.s32 %s1900_s16, %s2103_s20  ;;  %p45_p13 = scmp.ne.s32.totalorder %s1896_s15, %s1892_s14 }
  0x42   : > { %p36_p6 = scmp.eq.s32.totalorder %s35_s29, 0  ;;  %p46_p10 = scmp.eq.s32.totalorder %s1900_s16, 0 }
  0x43   : > { %p2498_p3 = scmp.eq.s32.totalorder %s2012_s17, 1  ;;  %p1598_p7 = scmp.lt.s32.totalorder %s1900_s16, 2 }
  0x44   : > { %s2119_s11 = scalar_select %p36_p6, %s1896_s15, %s38_s24  }
  0x45   : > { %p2113_p5 = por %p2498_p3, %p45_p13  ;;  %p47_p9 = por %p46_p10, %p45_p13 }
  0x46   : > { %s341_s12 = sand.u32 1, %s1896_s15   ;;  %s1435_s26 = sshll.u32 %s1900_s16, 7 }
  0x47   : > { %s2499_s30 = scalar_select %p2113_p5, 1, 0 }
  0x48   : > { %s1434_s22 = sshll.u32 %s341_s12, 3  ;;  %s2500_s0 = sld [smem:[#allocation19_spill]] }
  0x49   : > { %s345_s23 = scalar_lea.vmem [#allocation3], %s1434_s22  ;;  %p2130_p11 = pnand %p1598_p7, %p47_p9 }
  0x4a   : > { %s352_s13 = sshll.u32 %s345_s23, 4  ;;  %s342_s24 = scalar_lea.sflag [#allocation4], %s341_s12  ;;  %s2128_s13 = int_to_ptr.vmem [resolvable:$true] %s352_s13 }
  0x4b   : > { %p1742_p0 = pneg %p2130_p11 }
  0x4e   : > { %s2126_s25 = scalar_lea.hbm %s2500_s0, %s1435_s26  ;;  %s1745_s27 = scalar_lea.hbm %s2500_s0, 256 }
  0x4f   : > { %s1740_s29 = scalar_lea.hbm %s2126_s25, 128  ;;  %p1746_p13 = scmp.lt.u32.totalorder %s2126_s25, %s2500_s0 }
  0x50   : > { %p1741_p12 = scmp.ne.s32.totalorder %s2126_s25, %s1740_s29  ;;  %p1747_p6 = scmp.lt.u32.totalorder %s1745_s27, %s1740_s29 }
  0x51   : > { %p1749_p3 = scmp.lt.u32.totalorder %s1740_s29, %s2126_s25 }
  0x52   : > { %p1743_p2 = pnand %p1742_p0, %p1741_p12  ;;  %p1748_p10 = por %p1747_p6, %p1746_p13 }
  0x54   : > { %p1744_p1 = pneg %p1743_p2  ;;  %p1750_p7 = por %p1749_p3, %p1748_p10 }
  0x56   : > { %p1751_p9 = pnand %p1750_p7, %p1744_p1 }
  0x58   : > { %1754 = shalt.err (!%p1751_p9)
}
  0x59   : > { %s1755_s12 = scalar_lea.vmem %s2128_s13, 128  ;;  %s1906_s26 = smov [#allocation3]  }
  0x5a   : > { %p1756_p12 = scmp.ne.s32.totalorder %s2128_s13, %s1755_s12  ;;  %s1760_s22 = sshll.u32 %s1906_s26, 4  ;;  %s1761_s22 = int_to_ptr.vmem [resolvable:$false] %s1760_s22 }
  0x5b   : > { %s1762_s28 = scalar_lea.vmem %s1761_s22, 256  ;;  %p1763_p4 = scmp.lt.s32.totalorder %s2128_s13, %s1761_s22 }
  0x5c   : > { %p1758_p2 = pnand %p1756_p12, %p1742_p0  ;;  %p1764_p13 = scmp.lt.s32.totalorder %s1762_s28, %s1755_s12 }
  0x5e   : > { %p1759_p5 = pneg %p1758_p2  ;;  %p1765_p6 = por %p1764_p13, %p1763_p4 }
  0x60   : > { %p1766_p10 = pnand %p1765_p6, %p1759_p5 }
  0x62   : > { %1769 = shalt.err (!%p1766_p10)
}
  0x63   : > { %1585 = dma.hbm_to_vmem [thread:$0]  (!%p2130_p11), %s2126_s25, 128, %s2128_s13, %s342_s24  }
  0x64   : > { %361 = sbr.rel (%p2033_p8) target bundleno = 1866 (0x74a), region = 52  ;;  %s2162_s29 = sand.u32 (!%p2033_p8), 1, %s1892_s14  }
  0x65   : > { %s2165_s27 = sshll.u32 (!%p2033_p8), %s2162_s29, 3  ;;  %s364_s23 = scalar_lea.sflag (!%p2033_p8), [#allocation4], %s2162_s29 }
  0x66   : > { %s367_s12 = scalar_lea.vmem (!%p2033_p8), [#allocation3], %s2165_s27  ;;  %p2502_p4 = scmp.ne.s32.totalorder (!%p2033_p8), %s2493_s19, 0 }
  0x6b   : > { %1871 = dma.done.wait (%p2502_p4), %s364_s23, 128  }
  0x6c   : > { %1873 = vsyncadd (%p2502_p4), %s364_s23, 4294967168  ;;  %p2503_p5 = scmp.eq.s32.totalorder %s2012_s17, 0 }
  0x6e   : > { %1875 = dma.done.wait (%p2503_p5), [#allocation7], 512   ;;  %p2504_p8 = pmov %p2503_p5 }
  0x6f   : > { %v1907_v0 = vmov 0.0   ;;  %vm1908_vm0 = vmmov 0   ;;  %v1664_v1 = vld [vmem:[#allocation6] sm:$0xff]   ;;  %v1665_v2 = vld [vmem:[#allocation6 + $0x8] sm:$0xff]   ;;  %v423_v3 = vld [vmem:[%s367_s12] sm:$0xff]  ;;  %vm448_vm1 = vcmask 261120  }
  0x70   : > { %1877 = vsyncadd (%p2504_p8), [#allocation7], 4294966784  ;;  %1495 = vmatprep.subr.bf16.mxu0 %v1907_v0  ;;  %1499 = vmatprep.mubr.msk.bf16.mxu0 %vm1908_vm0, %v1907_v0  ;;  %v424_v4 = vpack.c.bf16 %v423_v3, %v423_v3  ;;  %v1443_v5 = vld [vmem:[%s2476_s2] ss:$0 sm:$0xff]  ;;  %s1909_s25 = smov 92   ;;  %s1910_s13 = smov 84  }
  0x71   : > { %1503 = vmatprep.subr.bf16.mxu1 %v1907_v0  ;;  %1505 = vmatprep.mubr.msk.bf16.mxu1 %vm1908_vm0, %v1907_v0  ;;  %s1911_s18 = smov 100   ;;  %s1912_s24 = smov 124   ;;  %v2214_v12 = vld [vmem:[%s2479_s5] sm:$0xff]  ;;  %vm503_vm2 = vcmask 31744   ;;  %vm531_vm3 = vcmask 64512   ;;  %vm601_vm4 = vcmask 1043456  }
  0x72   : > { %1496 = vmatpush3.bf16.msra.mxu0 %v1664_v1  ;;  %s1913_s26 = smov 116   ;;  %s1914_s22 = smov 76   ;;  %v2224_v17 = vld [vmem:[%s2480_s6] sm:$0xff]  ;;  %vm646_vm5 = vcmask 60416   ;;  %vm816_vm6 = vcmask 126016   ;;  %vm984_vm7 = vcmask 191616  }
  0x73   : > { %1497 = vmatprep.subr.bf16.mxu0 %v1907_v0  ;;  %s1915_s28 = smov 108   ;;  %s1916_s23 = smov 68   ;;  %vm822_vm8 = vcmask 130112   ;;  %vm1152_vm9 = vcmask 257216   ;;  %vm990_vm10 = vcmask 195712   ;;  %vm1158_vm11 = vcmask 261312  }
  0x74   : > { %s1917_s21 = smov 32   ;;  %s1923_s12 = smov 24  }
  0x75   : > { %s1925_s19 = smov 4   ;;  %p2505_p0 = scmp.ne.s32.totalorder %s2499_s30, 0 }
  0x76   : > { %1498 = vmatpush3.bf16.msra.mxu0 %v1665_v2 }
  0x77   : > { %1509 = vmatprep.subr.bf16.mxu0 %v1907_v0 }
  0x79   : > { %1500 = vmatmul.mubr.msk.bf16.vlgmr.msra.gmra.mrb[0].mxu0 %vm448_vm1, %v424_v4 }
  0x7a   : > { %1511 = vmatprep.mubr.msk.bf16.mxu0 %vm1908_vm0, %v1907_v0 }
 0x14c   : > { %v486_v6 = vpop.f32.mrb[0].mxu0 }
 0x14d   : > { %v2191_v7 = vadd.f32 %v1443_v5, %v486_v6  ;;  %v1501_v8 = vpop.f32.mrb[1].mxu0 }
 0x14e   : > { %v489_v9 = vpop.f32.mrb[2].mxu0 }
 0x14f   : > { %677 = vrot.lane.b32.xlu1 %v2191_v7, %s1909_s25  ;;  %v1502_v10 = vpop.f32.mrb[3].mxu0  ;;  %v2195_v11 = vsub.f32 0.0, %v2191_v7 }
 0x151   : > { %508 = vrot.lane.b32.xlu0 %v2195_v11, %s1909_s25  ;;  %s1918_s25 = smov 40  }
 0x153   : > { %674 = vrot.lane.b32.xlu1 %v2195_v11, %s1910_s13 }
 0x155   : > { %511 = vrot.lane.b32.xlu0 %v2191_v7, %s1911_s18 }
 0x157   : > { %660 = vrot.lane.b32.xlu1 %v2191_v7, %s1912_s24 }
 0x159   : > { %657 = vrot.lane.b32.xlu0 %v2195_v11, %s1913_s26 }
 0x15b   : > { %845 = vrot.lane.b32.xlu1 %v2191_v7, %s1910_s13  ;;  %s1919_s13 = smov 8  }
 0x15d   : > { %842 = vrot.lane.b32.xlu0 %v2195_v11, %s1914_s22 }
 0x15f   : > { %828 = vrot.lane.b32.xlu1 %v2191_v7, %s1913_s26  ;;  %s1928_s26 = smov 80  }
 0x161   : > { %825 = vrot.lane.b32.xlu0 %v2195_v11, %s1915_s28 }
 0x163   : > { %1013 = vrot.lane.b32.xlu1 %v2191_v7, %s1914_s22  ;;  %s1920_s22 = smov 48  }
 0x165   : > { %1010 = vrot.lane.b32.xlu0 %v2195_v11, %s1916_s23  ;;  %s1922_s23 = smov 56  }
 0x167   : > { %996 = vrot.lane.b32.xlu1 %v2191_v7, %s1915_s28  ;;  %s1921_s28 = smov 16  }
 0x169   : > { %993 = vrot.lane.b32.xlu0 %v2195_v11, %s1911_s18  ;;  %s1927_s18 = smov 120  }
 0x16d   : > { %516 = vrot.lane.b32.xlu0 %v2214_v12, %s1917_s21 }
 0x171   : > { %681 = vrot.lane.b32.xlu0 %v2214_v12, %s1918_s25 }
 0x175   : > { %664 = vrot.lane.b32.xlu0 %v2214_v12, %s1919_s13 }
 0x1c1   : > { %v678_v13 = vpop.permute.xlu1 %677 }
 0x1c3   : > { %v509_v14 = vpop.permute.xlu0 %508 }
 0x1c5   : > { %v675_v15 = vpop.permute.xlu1 %674 }
 0x1c6   : > { %v680_v21 = vsel %vm503_vm2, %v675_v15, %v678_v13 }
 0x1c7   : > { %v512_v16 = vpop.permute.xlu0 %511  ;;  %v685_v24 = vmul.f32 %v680_v21, %v2224_v17 }
 0x1c8   : > { %v514_v18 = vsel %vm503_vm2, %v509_v14, %v512_v16 }
 0x1c9   : > { %v520_v19 = vmul.f32 %v514_v18, %v2224_v17  ;;  %v661_v20 = vpop.permute.xlu1 %660 }
 0x1cb   : > { %522 = vrot.lane.b32.xlu1 %v520_v19, %s1917_s21  ;;  %v658_v22 = vpop.permute.xlu0 %657  ;;  %s1926_s21 = smov 88  }
 0x1cc   : > { %v663_v23 = vsel %vm503_vm2, %v658_v22, %v661_v20  ;;  %v505_v22 = vmul.f32 %v2214_v12, %v2191_v7 }
 0x1cd   : > { %v668_v25 = vmul.f32 %v663_v23, %v2224_v17  ;;  %v846_v26 = vpop.permute.xlu1 %845 }
 0x1cf   : > { %687 = vrot.lane.b32.xlu1 %v685_v24, %s1918_s25  ;;  %670 = vrot.lane.b32.xlu0 %v668_v25, %s1919_s13  ;;  %v843_v27 = vpop.permute.xlu0 %842 }
 0x1d0   : > { %v848_v29 = vsel %vm503_vm2, %v843_v27, %v846_v26 }
 0x1d1   : > { %v829_v28 = vpop.permute.xlu1 %828  ;;  %v853_v32 = vmul.f32 %v848_v29, %v2224_v17 }
 0x1d3   : > { %849 = vrot.lane.b32.xlu1 %v2214_v12, %s1920_s22  ;;  %832 = vrot.lane.b32.xlu0 %v2214_v12, %s1921_s28  ;;  %v826_v30 = vpop.permute.xlu0 %825 }
 0x1d4   : > { %v831_v31 = vsel %vm503_vm2, %v826_v30, %v829_v28 }
 0x1d5   : > { %v836_v33 = vmul.f32 %v831_v31, %v2224_v17  ;;  %v1014_v34 = vpop.permute.xlu1 %1013 }
 0x1d7   : > { %855 = vrot.lane.b32.xlu1 %v853_v32, %s1920_s22  ;;  %838 = vrot.lane.b32.xlu0 %v836_v33, %s1921_s28  ;;  %v1011_v35 = vpop.permute.xlu0 %1010 }
 0x1d8   : > { %v1016_v36 = vsel %vm503_vm2, %v1011_v35, %v1014_v34  ;;  %v579_v34 = vld [vmem:[%s2481_s7] sm:$0xff] }
 0x1d9   : > { %v1021_v38 = vmul.f32 %v1016_v36, %v2224_v17  ;;  %v997_v39 = vpop.permute.xlu1 %996 }
 0x1db   : > { %1017 = vrot.lane.b32.xlu1 %v2214_v12, %s1922_s23  ;;  %1000 = vrot.lane.b32.xlu0 %v2214_v12, %s1923_s12  ;;  %v994_v37 = vpop.permute.xlu0 %993 }
 0x1dc   : > { %v999_v40 = vsel %vm503_vm2, %v994_v37, %v997_v39 }
 0x1dd   : > { %v1004_v41 = vmul.f32 %v999_v40, %v2224_v17 }
 0x1df   : > { %1023 = vrot.lane.b32.xlu1 %v1021_v38, %s1922_s23  ;;  %v517_v42 = vpop.permute.xlu0 %516 }
 0x1e0   : > { %v519_v44 = vmul.f32 %v517_v42, %v2191_v7 }
 0x1e3   : > { %1006 = vrot.lane.b32.xlu1 %v1004_v41, %s1923_s12  ;;  %v682_v43 = vpop.permute.xlu0 %681 }
 0x1e4   : > { %v684_v48 = vmul.f32 %v682_v43, %v2191_v7 }
 0x1e7   : > { %496 = vrot.lane.b32.xlu1 %v2195_v11, %s1912_s24  ;;  %v665_v45 = vpop.permute.xlu0 %664  ;;  %s1924_s24 = smov 96  }
 0x1e8   : > { %v667_v52 = vmul.f32 %v665_v45, %v2191_v7 }
 0x23d   : > { %v523_v46 = vpop.permute.xlu1 %522 }
 0x23e   : > { %v2257_v47 = vadd.f32 %v523_v46, %v519_v44 }
 0x240   : > { %v527_v49 = vpack.c.bf16 %v2257_v47, %v2257_v47 }
 0x241   : > { %v688_v50 = vpop.permute.xlu1 %687  ;;  %v671_v51 = vpop.permute.xlu0 %670 }
 0x242   : > { %v2263_v53 = vadd.f32 %v688_v50, %v684_v48  ;;  %529 = vrot.lane.b32.xlu0 %v527_v49, %s1924_s24  ;;  %v673_v55 = vadd.f32 %v671_v51, %v667_v52 }
 0x244   : > { %v692_v54 = vpack.c.bf16 %v2263_v53, %v2263_v53  ;;  %v691_v58 = vpack.c.bf16 %v673_v55, %v673_v55 }
 0x245   : > { %v850_v56 = vpop.permute.xlu1 %849  ;;  %v833_v57 = vpop.permute.xlu0 %832 }
 0x246   : > { %500 = vrot.lane.b32.xlu0 %v2191_v7, %s1925_s19  ;;  %697 = vrot.lane.b32.xlu1 %v692_v54, %s1926_s21  ;;  %v852_v59 = vmul.f32 %v850_v56, %v2191_v7  ;;  %v835_v60 = vmul.f32 %v833_v57, %v2191_v7  ;;  %s1929_s19 = smov 112   ;;  %s1930_s21 = smov 72  }
 0x249   : > { %v856_v61 = vpop.permute.xlu1 %855  ;;  %v839_v62 = vpop.permute.xlu0 %838 }
 0x24a   : > { %v2271_v63 = vadd.f32 %v856_v61, %v852_v59  ;;  %v841_v1 = vadd.f32 %v839_v62, %v835_v60  ;;  %694 = vrot.lane.b32.xlu0 %v691_v58, %s1927_s18  ;;  %s1931_s18 = smov 104  }
 0x24c   : > { %v860_v2 = vpack.c.bf16 %v2271_v63, %v2271_v63  ;;  %v859_v3 = vpack.c.bf16 %v841_v1, %v841_v1 }
 0x24d   : > { %v1018_v4 = vpop.permute.xlu1 %1017  ;;  %v1001_v6 = vpop.permute.xlu0 %1000 }
 0x24e   : > { %865 = vrot.lane.b32.xlu1 %v860_v2, %s1928_s26  ;;  %862 = vrot.lane.b32.xlu0 %v859_v3, %s1929_s19  ;;  %v1020_v5 = vmul.f32 %v1018_v4, %v2191_v7  ;;  %v1003_v10 = vmul.f32 %v1001_v6, %v2191_v7 }
 0x251   : > { %v1024_v8 = vpop.permute.xlu1 %1023 }
 0x252   : > { %v2276_v9 = vadd.f32 %v1024_v8, %v1020_v5 }
 0x254   : > { %v1028_v11 = vpack.c.bf16 %v2276_v9, %v2276_v9 }
 0x255   : > { %v1007_v13 = vpop.permute.xlu1 %1006 }
 0x256   : > { %v1009_v14 = vadd.f32 %v1007_v13, %v1003_v10  ;;  %1033 = vrot.lane.b32.xlu1 %v1028_v11, %s1930_s21  ;;  %s1932_s21 = smov 64  }
 0x258   : > { %v1027_v15 = vpack.c.bf16 %v1009_v14, %v1009_v14 }
 0x259   : > { %v497_v19 = vpop.permute.xlu1 %496 }
 0x25a   : > { %1030 = vrot.lane.b32.xlu0 %v1027_v15, %s1931_s18 }
 0x2b4   : > { %v530_v16 = vpop.permute.xlu0 %529 }
 0x2b5   : > { %v536_v18 = vsel %vm531_vm3, %v530_v16, 0 }
 0x2b6   : > { %1504 = vmatpush3.bf16.xpose.msra.mxu1 %v536_v18 }
 0x2b7   : > { %1515 = vmatprep.subr.bf16.mxu1 %v1907_v0 }
 0x2b8   : > { %v501_v20 = vpop.permute.xlu0 %500  ;;  %v698_v25 = vpop.permute.xlu1 %697 }
 0x2b9   : > { %v504_v21 = vsel %vm503_vm2, %v497_v19, %v501_v20  ;;  %v703_v27 = vsel %vm531_vm3, %v698_v25, 0  ;;  %v594_v25 = vpack.c.bf16 %v2191_v7, %v2191_v7 }
 0x2ba   : > { %v506_v23 = vmul.f32 %v504_v21, %v2224_v17 }
 0x2bc   : > { %v507_v24 = vadd.f32 %v506_v23, %v505_v22  ;;  %v695_v29 = vpop.permute.xlu0 %694 }
 0x2be   : > { %v526_v26 = vpack.c.bf16 %v507_v24, %v507_v24 }
 0x2c0   : > { %1506 = vmatmul.mubr.msk.bf16.vlgmr.msra.gmra.mrb[0].mxu1 %vm531_vm3, %v526_v26  ;;  %v866_v28 = vpop.permute.xlu1 %865  ;;  %v863_v17 = vpop.permute.xlu0 %862 }
 0x2c1   : > { %1516 = vmatpush3.bf16.xpose.msra.mxu1 %v703_v27  ;;  %1517 = vmatprep.mubr.msk.bf16.mxu1 %vm1908_vm0, %v1907_v0  ;;  %v871_v30 = vsel %vm531_vm3, %v866_v28, 0 }
 0x2c2   : > { %1527 = vmatprep.subr.bf16.mxu1 %v1907_v0 }
 0x2c8   : > { %1518 = vmatmul.mubr.msk.bf16.vlgmr.msra.gmra.mrb[4].mxu1 %vm531_vm3, %v695_v29  ;;  %v1034_v12 = vpop.permute.xlu1 %1033 }
 0x2c9   : > { %1528 = vmatpush3.bf16.xpose.msra.mxu1 %v871_v30  ;;  %1529 = vmatprep.mubr.msk.bf16.mxu1 %vm1908_vm0, %v1907_v0  ;;  %v1039_v31 = vsel %vm531_vm3, %v1034_v12, 0 }
 0x2ca   : > { %1539 = vmatprep.subr.bf16.mxu1 %v1907_v0 }
 0x2cc   : > { %v1031_v32 = vpop.permute.xlu0 %1030 }
 0x2d0   : > { %1530 = vmatmul.mubr.msk.bf16.vlgmr.msra.gmra.mrb[8].mxu1 %vm531_vm3, %v863_v17 }
 0x2d1   : > { %1540 = vmatpush3.bf16.xpose.msra.mxu1 %v1039_v31  ;;  %1541 = vmatprep.mubr.msk.bf16.mxu1 %vm1908_vm0, %v1907_v0 }
 0x2d2   : > { %1551 = vmatprep.subr.bf16.mxu1 %v1907_v0 }
 0x2d8   : > { %1542 = vmatmul.mubr.msk.bf16.vlgmr.msra.gmra.mrb[12].mxu1 %vm531_vm3, %v1031_v32 }
 0x2d9   : > { %1555 = vmatprep.mubr.msk.bf16.mxu1 %vm1908_vm0, %v1907_v0 }
 0x393   : > { %v572_v33 = vpop.f32.mrb[0].mxu1 }
 0x394   : > { %v578_v35 = vmul.f32 0.35355338, %v572_v33  ;;  %v1507_v36 = vpop.f32.mrb[1].mxu1 }
 0x395   : > { %v575_v37 = vpop.f32.mrb[2].mxu1 }
 0x396   : > { %v580_v38 = vadd.f32 %v579_v34, %v578_v35  ;;  %v1508_v39 = vpop.f32.mrb[3].mxu1 }
 0x398   : > { %v581_v40 = vmax.f32 %v580_v38, -3.4028235e+38 }
 0x39a   : > { %v582_v41 = vsel %vm531_vm3, %v581_v40, -inf }
 0x39b   : > { %583 = vmax.xlane.f32.xlu1 %v582_v41  ;;  %v739_v42 = vpop.f32.mrb[4].mxu1 }
 0x39c   : > { %v745_v43 = vmul.f32 0.35355338, %v739_v42  ;;  %v1519_v44 = vpop.f32.mrb[5].mxu1 }
 0x39d   : > { %v742_v45 = vpop.f32.mrb[6].mxu1 }
 0x39e   : > { %v747_v46 = vadd.f32 %v745_v43, %v579_v34  ;;  %v1520_v48 = vpop.f32.mrb[7].mxu1 }
 0x3a0   : > { %v748_v49 = vmax.f32 %v747_v46, -3.4028235e+38 }
 0x3a2   : > { %v749_v50 = vsel %vm531_vm3, %v748_v49, -inf }
 0x3a3   : > { %750 = vmax.xlane.f32.xlu0 %v749_v50  ;;  %v907_v51 = vpop.f32.mrb[8].mxu1 }
 0x3a4   : > { %v913_v52 = vmul.f32 0.35355338, %v907_v51  ;;  %v1531_v54 = vpop.f32.mrb[9].mxu1 }
 0x3a5   : > { %v910_v55 = vpop.f32.mrb[10].mxu1 }
 0x3a6   : > { %v915_v56 = vadd.f32 %v913_v52, %v579_v34  ;;  %v1532_v57 = vpop.f32.mrb[11].mxu1 }
 0x3a8   : > { %v916_v58 = vmax.f32 %v915_v56, -3.4028235e+38 }
 0x3aa   : > { %v917_v59 = vsel %vm531_vm3, %v916_v58, -inf }
 0x3ab   : > { %918 = vmax.xlane.f32.xlu0 %v917_v59  ;;  %v1075_v60 = vpop.f32.mrb[12].mxu1 }
 0x3ac   : > { %v1081_v61 = vmul.f32 0.35355338, %v1075_v60  ;;  %v1543_v62 = vpop.f32.mrb[13].mxu1 }
 0x3ad   : > { %v1078_v1 = vpop.f32.mrb[14].mxu1 }
 0x3ae   : > { %v1083_v2 = vadd.f32 %v1081_v61, %v579_v34  ;;  %v1544_v3 = vpop.f32.mrb[15].mxu1 }
 0x3af   : > { %v1666_v3 = vld [vmem:[#allocation8] sm:$0xff]  }
 0x3b0   : > { %v1084_v4 = vmax.f32 %v1083_v2, -3.4028235e+38  ;;  %1552 = vmatpush3.bf16.msra.mxu1 %v1666_v3 }
 0x3b1   : > { %1553 = vmatprep.subr.bf16.mxu1 %v1907_v0 }
 0x3b2   : > { %v1085_v5 = vsel %vm531_vm3, %v1084_v4, -inf }
 0x3b3   : > { %1086 = vmax.xlane.f32.xlu1 %v1085_v5 }
 0x428   : > { %v584_v6 = vpop.xlane.xlu1 %583 }
 0x429   : > { %v585_v8 = vsub.f32 %v581_v40, %v584_v6 }
 0x42b   : > { %v586_v10 = vmul.f32 1.442695, %v585_v8 }
 0x42d   : > { %1668 = vpow2.f32 %v586_v10  ;;  %v1667_v10 = vld [vmem:[#allocation8 + $0x8] sm:$0xff]  }
 0x42e   : > { %1554 = vmatpush3.bf16.msra.mxu1 %v1667_v10 }
 0x430   : > { %v751_v11 = vpop.xlane.xlu0 %750 }
 0x431   : > { %v752_v13 = vsub.f32 %v748_v49, %v751_v11 }
 0x433   : > { %v753_v14 = vmul.f32 1.442695, %v752_v13 }
 0x435   : > { %1670 = vpow2.f32 %v753_v14 }
 0x437   : > { %v1669_v15 = vpop.eup %1668 }
 0x438   : > { %v919_v16 = vpop.xlane.xlu0 %918  ;;  %v588_v18 = vsel %vm531_vm3, %v1669_v15, 0.0 }
 0x439   : > { %v920_v19 = vsub.f32 %v916_v58, %v919_v16  ;;  %589 = vadd.xlane.f32.xlu0 %v588_v18 }
 0x43b   : > { %v921_v20 = vmul.f32 1.442695, %v920_v19 }
 0x43d   : > { %1672 = vpow2.f32 %v921_v20 }
 0x43f   : > { %v1671_v21 = vpop.eup %1670 }
 0x440   : > { %v755_v22 = vsel %vm531_vm3, %v1671_v21, 0.0  ;;  %v1087_v26 = vpop.xlane.xlu1 %1086 }
 0x441   : > { %756 = vadd.xlane.f32.xlu1 %v755_v22  ;;  %v1088_v27 = vsub.f32 %v1084_v4, %v1087_v26 }
 0x443   : > { %v1089_v28 = vmul.f32 1.442695, %v1088_v27 }
 0x445   : > { %1674 = vpow2.f32 %v1089_v28 }
 0x447   : > { %v1673_v23 = vpop.eup %1672 }
 0x448   : > { %v923_v24 = vsel %vm531_vm3, %v1673_v23, 0.0 }
 0x449   : > { %924 = vadd.xlane.f32.xlu0 %v923_v24 }
 0x44f   : > { %v1675_v29 = vpop.eup %1674 }
 0x450   : > { %v1091_v30 = vsel %vm531_vm3, %v1675_v29, 0.0 }
 0x452   : > { %761 = vrot.lane.b32.xlu1 %v594_v25, %s1922_s23 }
 0x45f   : > { %596 = vrot.lane.b32.xlu0 %v594_v25, %s1932_s21 }
 0x463   : > { %1097 = vrot.lane.b32.xlu0 %v594_v25, %s1918_s25  ;;  %s414_s25 = scalar_lea.vmem [#allocation10], %s2165_s27 }
 0x464   : > { %s1266_s18 = sshll.u32 %s414_s25, 4  ;;  %s1267_s18 = int_to_ptr.vmem [resolvable:$true] %s1266_s18 }
 0x465   : > { %s1770_s19 = scalar_lea.vmem %s1267_s18, 128 }
 0x466   : > { %p1771_p11 = scmp.ne.s32.totalorder %s1267_s18, %s1770_s19 }
 0x468   : > { %p1772_p1 = pnand %p1771_p11, %p2505_p0 }
 0x46a   : > { %p1773_p3 = pneg %p1772_p1 }
 0x476   : > { %1092 = vadd.xlane.f32.xlu1 %v1091_v30 }
 0x487   : > { %929 = vrot.lane.b32.xlu1 %v594_v25, %s1920_s22  ;;  %s1234_s22 = sand.u32 1, %s2012_s17  }
 0x488   : > { %s2374_s26 = scalar_lea.sflag [#allocation11], %s1234_s22 }
 0x4c6   : > { %v590_v12 = vpop.xlane.xlu0 %589 }
 0x4c7   : > { %1676 = vrcp.f32 %v590_v12 }
 0x4ce   : > { %v757_v17 = vpop.xlane.xlu1 %756 }
 0x4cf   : > { %1678 = vrcp.f32 %v757_v17 }
 0x4d1   : > { %v1677_v31 = vpop.eup %1676 }
 0x4d2   : > { %v592_v33 = vmul.f32 %v1677_v31, %v1669_v15  ;;  %v762_v36 = vpop.permute.xlu1 %761 }
 0x4d3   : > { %v767_v39 = vsel %vm601_vm4, %v762_v36, 0 }
 0x4d4   : > { %v593_v37 = vpack.c.bf16 %v592_v33, %v592_v33 }
 0x4d6   : > { %v925_v32 = vpop.xlane.xlu0 %924 }
 0x4d7   : > { %1680 = vrcp.f32 %v925_v32 }
 0x4d9   : > { %v1679_v38 = vpop.eup %1678 }
 0x4da   : > { %v597_v34 = vpop.permute.xlu0 %596  ;;  %v759_v40 = vmul.f32 %v1679_v38, %v1671_v21 }
 0x4db   : > { %v603_v35 = vsel %vm601_vm4, %v597_v34, 0 }
 0x4dc   : > { %1510 = vmatpush3.bf16.msra.mxu0 %v603_v35  ;;  %v760_v41 = vpack.c.bf16 %v759_v40, %v759_v40 }
 0x4dd   : > { %1521 = vmatprep.subr.bf16.mxu0 %v1907_v0 }
 0x4de   : > { %v1098_v48 = vpop.permute.xlu0 %1097 }
 0x4df   : > { %1512 = vmatmul.mubr.msk.bf16.vlgmr.msra.gmra.mrb[4].mxu0 %vm531_vm3, %v593_v37  ;;  %v1103_v50 = vsel %vm601_vm4, %v1098_v48, 0 }
 0x4e0   : > { %1522 = vmatpush3.bf16.msra.mxu0 %v767_v39  ;;  %1523 = vmatprep.mubr.msk.bf16.mxu0 %vm1908_vm0, %v1907_v0 }
 0x4e1   : > { %1533 = vmatprep.subr.bf16.mxu0 %v1907_v0  ;;  %v1681_v42 = vpop.eup %1680 }
 0x4e2   : > { %v927_v44 = vmul.f32 %v1681_v42, %v1673_v23 }
 0x4e4   : > { %v928_v49 = vpack.c.bf16 %v927_v44, %v927_v44 }
 0x4e7   : > { %1524 = vmatmul.mubr.msk.bf16.vlgmr.msra.gmra.mrb[8].mxu0 %vm531_vm3, %v760_v41 }
 0x4e8   : > { %1535 = vmatprep.mubr.msk.bf16.mxu0 %vm1908_vm0, %v1907_v0 }
 0x503   : > { %v1093_v43 = vpop.xlane.xlu1 %1092 }
 0x504   : > { %1682 = vrcp.f32 %v1093_v43 }
 0x507   : > { %v930_v45 = vpop.permute.xlu1 %929 }
 0x508   : > { %v935_v46 = vsel %vm601_vm4, %v930_v45, 0 }
 0x509   : > { %1534 = vmatpush3.bf16.msra.mxu0 %v935_v46 }
 0x50a   : > { %1545 = vmatprep.subr.bf16.mxu0 %v1907_v0 }
 0x50c   : > { %1536 = vmatmul.mubr.msk.bf16.vlgmr.msra.gmra.mrb[12].mxu0 %vm531_vm3, %v928_v49 }
 0x50d   : > { %1546 = vmatpush3.bf16.msra.mxu0 %v1103_v50  ;;  %1547 = vmatprep.mubr.msk.bf16.mxu0 %vm1908_vm0, %v1907_v0 }
 0x50e   : > { %v1683_v51 = vpop.eup %1682 }
 0x50f   : > { %v1095_v52 = vmul.f32 %v1683_v51, %v1675_v29 }
 0x511   : > { %v1096_v54 = vpack.c.bf16 %v1095_v52, %v1095_v52 }
 0x514   : > { %1548 = vmatmul.mubr.msk.bf16.vlgmr.msra.gmra.mrb[16].mxu0 %vm531_vm3, %v1096_v54 }
 0x5b2   : > { %v639_v55 = vpop.f32.mrb[4].mxu0 }
 0x5b3   : > { %v645_v56 = vpack.c.bf16 %v639_v55, %v639_v55  ;;  %v1513_v57 = vpop.f32.mrb[5].mxu0 }
 0x5b4   : > { %v642_v58 = vpop.f32.mrb[6].mxu0 }
 0x5b5   : > { %647 = vst.msk [vmem:[#allocation2] sm:$0xf] %vm646_vm5, %v645_v56  ;;  %v1514_v59 = vpop.f32.mrb[7].mxu0 }
 0x5ba   : > { %v803_v60 = vpop.f32.mrb[8].mxu0 }
 0x5bb   : > { %v1470_v61 = vpack.c.bf16 %v803_v60, %v803_v60  ;;  %v1525_v62 = vpop.f32.mrb[9].mxu0 }
 0x5bc   : > { %v806_v1 = vpop.f32.mrb[10].mxu0 }
 0x5bd   : > { %813 = vrot.lane.b32.xlu1 %v1470_v61, %s1919_s13  ;;  %v1526_v2 = vpop.f32.mrb[11].mxu0  ;;  %s2356_s13 = scalar_lea.vmem [#allocation12], %s2165_s27 }
 0x5df   : > { %v971_v4 = vpop.f32.mrb[12].mxu0 }
 0x5e0   : > { %v1471_v5 = vpack.c.bf16 %v971_v4, %v971_v4  ;;  %v1537_v6 = vpop.f32.mrb[13].mxu0 }
 0x5e1   : > { %v974_v8 = vpop.f32.mrb[14].mxu0 }
 0x5e2   : > { %981 = vrot.lane.b32.xlu0 %v1471_v5, %s1921_s28  ;;  %v1538_v11 = vpop.f32.mrb[15].mxu0  ;;  %s2366_s28 = sshll.u32 %s2012_s17, 7 }
 0x5e6   : > { %649 = vrot.lane.b32.xlu0 %v2257_v47, %s1924_s24 }
 0x5e7   : > { %v1139_v13 = vpop.f32.mrb[16].mxu0 }
 0x5e8   : > { %v1472_v14 = vpack.c.bf16 %v1139_v13, %v1139_v13  ;;  %v1549_v15 = vpop.f32.mrb[17].mxu0 }
 0x5e9   : > { %v1142_v16 = vpop.f32.mrb[18].mxu0 }
 0x5ea   : > { %819 = vrot.lane.b32.xlu0 %v2263_v53, %s1924_s24  ;;  %1149 = vrot.lane.b32.xlu1 %v1472_v14, %s1923_s12  ;;  %v1550_v0 = vpop.f32.mrb[19].mxu0 }
 0x5ee   : > { %1155 = vrot.lane.b32.xlu0 %v2276_v9, %s1924_s24  ;;  %653 = vrot.lane.b32.xlu1 %v2191_v7, %s1932_s21  ;;  %s1933_s21 = smov [#allocation10]  }
 0x5ef   : > { %s1774_s0 = sshll.u32 %s1933_s21, 4  ;;  %s1775_s0 = int_to_ptr.vmem [resolvable:$false] %s1774_s0 }
 0x5f0   : > { %s1776_s17 = scalar_lea.vmem %s1775_s0, 256  ;;  %p1777_p7 = scmp.lt.s32.totalorder %s1267_s18, %s1775_s0 }
 0x5f1   : > { %p1778_p9 = scmp.lt.s32.totalorder %s1776_s17, %s1770_s19 }
 0x5f2   : > { %987 = vrot.lane.b32.xlu1 %v2271_v63, %s1924_s24  ;;  %s2372_s24 = scalar_lea.hbm %s2483_s9, %s2366_s28 }
 0x5f3   : > { %p1779_p12 = por %p1778_p9, %p1777_p7 }
 0x5f5   : > { %p1780_p2 = pnand %p1779_p12, %p1773_p3 }
 0x62f   : > { %v814_v47 = vpop.permute.xlu1 %813 }
 0x630   : > { %817 = vst.msk [vmem:[#allocation2] sm:$0xf] %vm816_vm6, %v814_v47 }
 0x654   : > { %v982_v18 = vpop.permute.xlu0 %981 }
 0x655   : > { %985 = vst.msk [vmem:[#allocation2] sm:$0xf] %vm984_vm7, %v982_v18 }
 0x658   : > { %v650_v53 = vpop.permute.xlu0 %649 }
 0x659   : > { %652 = vst.msk [vmem:[%s414_s25] sm:$0xff] %vm531_vm3, %v650_v53 }
 0x65c   : > { %v820_v9 = vpop.permute.xlu0 %819  ;;  %v1150_v19 = vpop.permute.xlu1 %1149 }
 0x65d   : > { %823 = vst.msk [vmem:[%s414_s25] sm:$0xff] %vm822_vm8, %v820_v9 }
 0x65e   : > { %1153 = vst.msk [vmem:[#allocation2] sm:$0xf] %vm1152_vm9, %v1150_v19 }
 0x660   : > { %v654_v7 = vpop.permute.xlu1 %653  ;;  %v1156_v21 = vpop.permute.xlu0 %1155 }
 0x661   : > { %656 = vst.msk [vmem:[%s2356_s13] sm:$0xff] %vm531_vm3, %v654_v7 }
 0x662   : > { %824 = vst.msk [vmem:[%s2356_s13] sm:$0xff] %vm822_vm8, %v654_v7 }
 0x663   : > { %992 = vst.msk [vmem:[%s2356_s13] sm:$0xff] %vm990_vm10, %v654_v7 }
 0x664   : > { %1160 = vst.msk [vmem:[%s2356_s13] sm:$0xff] %vm1158_vm11, %v654_v7  ;;  %v988_v63 = vpop.permute.xlu1 %987 }
 0x665   : > { %v1161_v20 = vld [vmem:[#allocation2] sm:$0xf]  ;;  %991 = vst.msk [vmem:[%s414_s25] sm:$0xff] %vm990_vm10, %v988_v63 }
 0x666   : > { %1556 = vmatmul.mubr.msk.bf16.vlgmr.msra.gmra.mrb[16].mxu1 %vm448_vm1, %v1161_v20  ;;  %1159 = vst.msk [vmem:[%s414_s25] sm:$0xff] %vm1158_vm11, %v1156_v21 }
 0x667   : > { %1783 = shalt.err (!%p1780_p2)
}
 0x668   : > { %s1784_s25 = scalar_lea.hbm %s2372_s24, 128  ;;  %s1788_s12 = scalar_lea.hbm %s2483_s9, 256 }
 0x669   : > { %p1785_p13 = scmp.ne.s32.totalorder %s2372_s24, %s1784_s25  ;;  %p1789_p4 = scmp.lt.u32.totalorder %s2372_s24, %s2483_s9 }
 0x66a   : > { %p1790_p5 = scmp.lt.u32.totalorder %s1788_s12, %s1784_s25  ;;  %p1792_p11 = scmp.lt.u32.totalorder %s1784_s25, %s2372_s24 }
 0x66b   : > { %p1786_p6 = pnand %p1785_p13, %p2505_p0 }
 0x66c   : > { %p1791_p8 = por %p1790_p5, %p1789_p4 }
 0x66d   : > { %p1787_p10 = pneg %p1786_p6 }
 0x66e   : > { %p1793_p1 = por %p1792_p11, %p1791_p8 }
 0x670   : > { %p1794_p3 = pnand %p1793_p1, %p1787_p10 }
 0x672   : > { %1797 = shalt.err (!%p1794_p3)
}
 0x673   : > { %1570 = dma.vmem_to_hbm [thread:$0]  (%p2505_p0), %s1267_s18, 128, %s2372_s24, %s2374_s26  }
 0x674   : > { %s2398_s22 = scalar_lea.hbm %s2484_s10, %s2366_s28  ;;  %s1279_s23 = sshll.u32 %s2356_s13, 4  ;;  %s1280_s23 = int_to_ptr.vmem [resolvable:$true] %s1279_s23 }
 0x675   : > { %s1798_s12 = scalar_lea.vmem %s1280_s23, 128  ;;  %s1934_s25 = smov [#allocation12]  }
 0x676   : > { %p1799_p7 = scmp.ne.s32.totalorder %s1280_s23, %s1798_s12  ;;  %s1802_s21 = sshll.u32 %s1934_s25, 4  ;;  %s1803_s21 = int_to_ptr.vmem [resolvable:$false] %s1802_s21 }
 0x677   : > { %s1804_s0 = scalar_lea.vmem %s1803_s21, 256  ;;  %p1805_p2 = scmp.lt.s32.totalorder %s1280_s23, %s1803_s21 }
 0x678   : > { %p1800_p9 = pnand %p1799_p7, %p2505_p0  ;;  %p1806_p13 = scmp.lt.s32.totalorder %s1804_s0, %s1798_s12 }
 0x67a   : > { %p1801_p12 = pneg %p1800_p9  ;;  %p1807_p6 = por %p1806_p13, %p1805_p2 }
 0x67c   : > { %p1808_p10 = pnand %p1807_p6, %p1801_p12 }
 0x67e   : > { %1811 = shalt.err (!%p1808_p10)
}
 0x67f   : > { %s1812_s13 = scalar_lea.hbm %s2398_s22, 128  ;;  %s1816_s19 = scalar_lea.hbm %s2484_s10, 256 }
 0x680   : > { %p1813_p4 = scmp.ne.s32.totalorder %s2398_s22, %s1812_s13  ;;  %p1817_p11 = scmp.lt.u32.totalorder %s2398_s22, %s2484_s10 }
 0x681   : > { %p1818_p1 = scmp.lt.u32.totalorder %s1816_s19, %s1812_s13  ;;  %p1820_p7 = scmp.lt.u32.totalorder %s1812_s13, %s2398_s22 }
 0x682   : > { %p1814_p5 = pnand %p1813_p4, %p2505_p0 }
 0x683   : > { %p1819_p3 = por %p1818_p1, %p1817_p11 }
 0x684   : > { %p1815_p8 = pneg %p1814_p5 }
 0x685   : > { %p1821_p9 = por %p1820_p7, %p1819_p3 }
 0x687   : > { %p1822_p12 = pnand %p1821_p9, %p1815_p8 }
 0x689   : > { %1825 = shalt.err (!%p1822_p12)
}
 0x68a   : > { %1571 = dma.vmem_to_hbm [thread:$0]  (%p2505_p0), %s1280_s23, 128, %s2398_s22, %s2374_s26   ;;  %v1458_v22 = vld [vmem:[%s2478_s4] ss:$0 sm:$0xff] }
 0x68b   : > { %s407_s0 = scalar_lea.vmem [#allocation9], %s2165_s27  ;;  %s2427_s19 = scalar_lea.hbm %s2482_s8, %s2366_s28 }
 0x68c   : > { %s1253_s24 = sshll.u32 %s407_s0, 4  ;;  %s1230_s26 = scalar_lea.sflag [#allocation5], %s2162_s29  ;;  %s2429_s24 = int_to_ptr.vmem [resolvable:$true] %s1253_s24 }
 0x68d   : > { %s1826_s27 = scalar_lea.vmem %s2429_s24, 128  ;;  %s1935_s22 = smov [#allocation9]  }
 0x68e   : > { %p1827_p2 = scmp.ne.s32.totalorder %s2429_s24, %s1826_s27  ;;  %s1830_s23 = sshll.u32 %s1935_s22, 4  ;;  %s1831_s23 = int_to_ptr.vmem [resolvable:$false] %s1830_s23 }
 0x68f   : > { %s1832_s28 = scalar_lea.vmem %s1831_s23, 256  ;;  %p1833_p10 = scmp.lt.s32.totalorder %s2429_s24, %s1831_s23 }
 0x690   : > { %p1828_p13 = pnand %p1827_p2, %p2505_p0  ;;  %p1834_p4 = scmp.lt.s32.totalorder %s1832_s28, %s1826_s27 }
 0x692   : > { %p1829_p6 = pneg %p1828_p13  ;;  %p1835_p5 = por %p1834_p4, %p1833_p10 }
 0x694   : > { %p1836_p8 = pnand %p1835_p5, %p1829_p6 }
 0x739   : > { %v1222_v23 = vpop.f32.mrb[16].mxu1 }
 0x73a   : > { %v1223_v24 = vadd.f32 %v1458_v22, %v1222_v23  ;;  %v1557_v25 = vpop.f32.mrb[17].mxu1 }
 0x73b   : > { %v1225_v26 = vpop.f32.mrb[18].mxu1 }
 0x73c   : > { %v1558_v27 = vpop.f32.mrb[19].mxu1  ;;  %1228 = vst.msk [vmem:[%s407_s0] sm:$0xff] %vm448_vm1, %v1223_v24 }
 0x73d   : > { %1839 = shalt.err (!%p1836_p8)
}
 0x73e   : > { %s1840_s29 = scalar_lea.hbm %s2427_s19, 128  ;;  %s1844_s12 = scalar_lea.hbm %s2482_s8, 256 }
 0x73f   : > { %p1841_p11 = scmp.ne.s32.totalorder %s2427_s19, %s1840_s29  ;;  %p1845_p7 = scmp.lt.u32.totalorder %s2427_s19, %s2482_s8 }
 0x740   : > { %p1846_p9 = scmp.lt.u32.totalorder %s1844_s12, %s1840_s29  ;;  %p1848_p2 = scmp.lt.u32.totalorder %s1840_s29, %s2427_s19 }
 0x741   : > { %p1842_p1 = pnand %p1841_p11, %p2505_p0 }
 0x742   : > { %p1847_p12 = por %p1846_p9, %p1845_p7 }
 0x743   : > { %p1843_p3 = pneg %p1842_p1 }
 0x744   : > { %p1849_p13 = por %p1848_p2, %p1847_p12 }
 0x746   : > { %p1850_p6 = pnand %p1849_p13, %p1843_p3 }
 0x748   : > { %1853 = shalt.err (!%p1850_p6)
}
 0x749   : > { %1569 = dma.vmem_to_hbm [thread:$0]  (%p2505_p0), %s2429_s24, 128, %s2427_s19, %s1230_s26  }
 0x74a PF: > { %s2506_s13 = sld [smem:[#allocation17_spill]]  ;;  %s2507_s18 = sld [smem:[#allocation18_spill]] }
 0x74b   : > { %p2509_p4 = scmp.ge.s32.totalorder %s1900_s16, 2 }
 0x750   : > { %s1291_s27 = sand.u32 1, %s2506_s13   ;;  %p2508_p10 = scmp.ne.s32.totalorder %s2507_s18, 0 }
 0x751   : > { %s1292_s22 = scalar_lea.sflag [#allocation5], %s1291_s27 }
 0x752   : > { %p1587_p5 = pnand %p2509_p4, %p2508_p10 }
 0x754   : > { %1879 = dma.done.wait (!%p1587_p5), %s1292_s22, 128  }
 0x755   : > { %1881 = vsyncadd (!%p1587_p5), %s1292_s22, 4294967168  ;;  %s2510_s23 = sadd.s32 4294967294, %s1900_s16  }
 0x756   : > { %s1300_s28 = sand.u32 1, %s2510_s23  }
 0x757   : > { %s1301_s29 = scalar_lea.sflag [#allocation11], %s1300_s28 }
 0x758   : > { %1883 = dma.done.wait (!%p1587_p5), %s1301_s29, 256  }
 0x759   : > { %1885 = vsyncadd (!%p1587_p5), %s1301_s29, 4294967040  ;;  %p28_p0 = scmp.ge.s32.totalorder %s2103_s20, 4   ;;  %s2511_s13 = smov %s1892_s14 }
 0x75a   : > { %s2512_s14 = smov %s1896_s15  ;;  %s2513_s15 = smov %s2119_s11 }
 0x75b   : > { %s2514_s16 = smov %s2103_s20  ;;  %30 = sbr.rel (!%p28_p0) target bundleno = 10 (0xa), region = 137 }
 0x762   :  { %1315 = vsyncpa [#allocation4], 1 }
 0x763   :  { %1317 = vsyncpa [#allocation4 + $0x1], 1 }
 0x764   :  { %1318 = vsyncpa [#allocation7], 1 }
 0x765   :  { %1319 = vsyncpa [#allocation5], 1 }
 0x766   :  { %1321 = vsyncpa [#allocation5 + $0x1], 1 }
 0x767   :  { %1322 = vsyncpa [#allocation11], 1 }
 0x768   :  { %1324 = vsyncpa [#allocation11 + $0x1], 1 }

</bundles_post_ra>
